<compile_context>
chip_gen: v7x
topology: tpu7x:2x2x1
jax: 0.10.0
libtpu: 0.0.40
codegen_flags: <defaults>
</compile_context>

<pallas_src>
import functools
import math

import numpy as np

import jax
import jax.numpy as jnp
from jax.experimental import pallas as pl

# ----------------------------------------------------------------------------
# Model hyper-parameters (small, consistent with the module's constructor).
# ----------------------------------------------------------------------------
WIDTH_PER_STAGE = [8, 16]
CARD_PER_STAGE = [2, 2]
BLOCKS_PER_STAGE = [1, 1]
EXPANSION = 2
KERNEL_SIZE = 3

NEG_SLOPE = 0.2                 # bias_act 'lrelu' default alpha
ACT_GAIN = math.sqrt(2.0)       # BiasedActivation.Gain

_F1D = np.array([1.0, 2.0, 1.0], np.float32)   # ResamplingFilter [1, 2, 1]

# TODO(synk): ConditionDimension / EmbeddingLayer path is unused (y=None) and
# is not implemented here.


# ----------------------------------------------------------------------------
# Constant "spatial operator" matrices.
#
# These are built once from static shapes and turn spatial shifts, the strided
# lowpass downsample and the per-batch basis reduction into plain 2-D MXU
# matmuls inside the kernel (no pads / reshapes / strided slices / im2col in
# the kernel body and no HBM-materialized patches outside it).
#
# Pixel index convention everywhere: m = (n * H + y) * W + x.
# ----------------------------------------------------------------------------
def _pix(n, y, x, H, W):
    return (n * H + y) * W + x


def _shiftT_matrices(N, H, W, k):
    """sh[t] is (M, M) with (A @ sh[t])[:, (n,y,x)] = A[:, (n, y+ky-p, x+kx-p)] (0 if OOB)."""
    M = N * H * W
    pad = (k - 1) // 2
    sh = np.zeros((k * k, M, M), np.float32)
    for ky in range(k):
        for kx in range(k):
            t = ky * k + kx
            for n in range(N):
                for y in range(H):
                    for x in range(W):
                        sy, sx = y + ky - pad, x + kx - pad
                        if 0 <= sy < H and 0 <= sx < W:
                            sh[t, _pix(n, sy, sx, H, W), _pix(n, y, x, H, W)] = 1.0
    return sh


def _downsampleT_matrix(N, H, W):
    """InterpolativeDownsampler([1,2,1]): depthwise [1,2,1]^2/16, stride 2.

    upfirdn2d padding for a 3-tap filter with down=2 is ((fw-d+1)//2, (fw-d)//2)
    = (1 before, 0 after) per spatial dim, i.e. source pixel (2*o + k - 1)."""
    Ho, Wo = H // 2, W // 2
    filt = np.outer(_F1D, _F1D) / 16.0
    D = np.zeros((N * H * W, N * Ho * Wo), np.float32)
    for n in range(N):
        for oy in range(Ho):
            for ox in range(Wo):
                dst = (n * Ho + oy) * Wo + ox
                for ky in range(3):
                    for kx in range(3):
                        iy, ix = 2 * oy + ky - 1, 2 * ox + kx - 1
                        if 0 <= iy < H and 0 <= ix < W:
                            D[_pix(n, iy, ix, H, W), dst] += filt[ky, kx]
    return D


def _batch_sumT_matrix(N, S):
    """(N*S, N) matrix summing the S pixels belonging to each batch element."""
    ss = np.zeros((N * S, N), np.float32)
    for n in range(N):
        ss[n * S:(n + 1) * S, n] = 1.0
    return ss


def _blockdiag_taps(w2, groups):
    """PyTorch grouped conv weight (Cout, Cin_g, k, k) -> (k*k, Cout, Cin_total)
    block-diagonal per-tap matrices (zero across groups)."""
    cout, cin_g, kh, kw = w2.shape
    cout_g = cout // groups
    taps = jnp.transpose(w2.reshape(cout, cin_g, kh * kw), (2, 0, 1))   # (K, cout, cin_g)
    blocks = []
    for g in range(groups):
        wg = taps[:, g * cout_g:(g + 1) * cout_g, :]
        left = jnp.zeros((kh * kw, cout_g, g * cin_g), w2.dtype)
        right = jnp.zeros((kh * kw, cout_g, (groups - 1 - g) * cin_g), w2.dtype)
        blocks.append(jnp.concatenate([left, wg, right], axis=2))
    return jnp.concatenate(blocks, axis=1)                              # (K, cout, Cin_total)


# ----------------------------------------------------------------------------
# Operand packing: flat list of arrays (activations transposed to (C, pixels),
# weights in their natural (Cout, Cin) layout) + static per-stage metadata.
# ----------------------------------------------------------------------------
def _pack_inputs(params, x_nchw):
    n, cin, h, w = x_nchw.shape
    assert cin == 3, "ExtractionLayer expects 3 input channels"
    x2d = jnp.transpose(x_nchw.astype(jnp.float32), (1, 0, 2, 3)).reshape(cin, n * h * w)

    we = params['extraction']
    arrays = [x2d, we.reshape(we.shape[0], cin)]
    meta = []

    H, W = h, w
    for stage in params['stages']:
        blocks = stage['blocks']
        card = int(stage['cardinality'])
        sm = {'n_blocks': len(blocks)}
        if blocks:
            k = int(blocks[0]['w2'].shape[2])
            sm['n_taps'] = k * k
            arrays.append(jnp.asarray(_shiftT_matrices(n, H, W, k)))
        for blk in blocks:
            cexp = blk['w1'].shape[0]
            cin_b = blk['w1'].shape[1]
            arrays += [
                blk['w1'].reshape(cexp, cin_b),          # (Cexp, Cin)
                blk['b1'].reshape(cexp, 1),              # (Cexp, 1)
                _blockdiag_taps(blk['w2'], card),        # (k*k, Cexp, Cexp)
                blk['b2'].reshape(cexp, 1),              # (Cexp, 1)
                blk['w3'].reshape(cin_b, cexp),          # (Cin, Cexp)
            ]
        t = stage['transition']
        if t['type'] == 'down':
            arrays.append(jnp.asarray(_downsampleT_matrix(n, H, W)))
            H, W = H // 2, W // 2
            sm['transition'] = 'down'
            sm['has_trans_w'] = t['w'] is not None
            if t['w'] is not None:
                wt = t['w']
                arrays.append(wt.reshape(wt.shape[0], wt.shape[1]))
        else:
            wb = t['wb']                                 # (C, 1, kh, kw) depthwise
            c, kh, kw = wb.shape[0], wb.shape[2], wb.shape[3]
            assert (H, W) == (kh, kw), "basis stage expects spatial == kernel (4x4)"
            arrays.append(jnp.tile(wb.reshape(c, kh * kw), (1, n)))     # (C, N*S)
            arrays.append(jnp.asarray(_batch_sumT_matrix(n, kh * kw)))  # (N*S, N)
            arrays.append(t['wl'])                                      # (1, C)
            sm['transition'] = 'basis'
        meta.append(sm)
    return arrays, meta, n


# ----------------------------------------------------------------------------
# The fused kernel: the entire Discriminator forward in one kernel body.
# All dots are plain 2-D MXU matmuls; bias + lrelu + gain ride the VPU as
# epilogues; nothing leaves VMEM until the final (1, N) logits store.
# ----------------------------------------------------------------------------
def _make_fused_kernel(meta):
    def _bias_act(v, b):
        # BiasedActivation: lrelu(v + bias, 0.2) * sqrt(2)
        y = v + b
        return jnp.where(y >= 0.0, y, NEG_SLOPE * y) * ACT_GAIN

    def kernel(*refs):
        o_ref = refs[-1]
        it = iter(refs[:-1])

        x = next(it)[...]                     # (3, M0)  pixels on the lane axis
        we = next(it)[...]                    # (C0, 3)
        a = jnp.dot(we, x, preferred_element_type=jnp.float32)       # ExtractionLayer

        for sm in meta:
            sh = next(it) if sm['n_blocks'] else None                 # (k*k, M, M)
            for _ in range(sm['n_blocks']):                           # ResidualBlock
                w1 = next(it); b1 = next(it); w2 = next(it)
                b2 = next(it); w3 = next(it)
                y = _bias_act(jnp.dot(w1[...], a, preferred_element_type=jnp.float32),
                              b1[...])
                z = None
                for k in range(sm['n_taps']):                         # grouped kxk conv
                    shifted = jnp.dot(y, sh[k], preferred_element_type=jnp.float32)
                    term = jnp.dot(w2[k], shifted, preferred_element_type=jnp.float32)
                    z = term if z is None else z + term
                z = _bias_act(z, b2[...])
                a = a + jnp.dot(w3[...], z, preferred_element_type=jnp.float32)

            if sm['transition'] == 'down':                            # DownsampleLayer
                sdt = next(it)
                a = jnp.dot(a, sdt[...], preferred_element_type=jnp.float32)
                if sm['has_trans_w']:
                    wt = next(it)
                    a = jnp.dot(wt[...], a, preferred_element_type=jnp.float32)
            else:                                                     # DiscriminativeBasis
                wbt = next(it); ssumt = next(it); wl = next(it)
                basis = jnp.dot(a * wbt[...], ssumt[...],
                                preferred_element_type=jnp.float32)   # (C, N)
                a = jnp.dot(wl[...], basis, preferred_element_type=jnp.float32)  # (1, N)

        o_ref[...] = a.astype(o_ref.dtype)

    return kernel


def discriminator_forward(params, x_nchw):
    """Discriminator.forward (ConditionDimension=None). x_nchw: (N, 3, H, W)."""
    arrays, meta, n = _pack_inputs(params, x_nchw)
    kernel = _make_fused_kernel(meta)
    # No grid: one launch, every operand is a whole-array VMEM block (~1 MB total).
    out = pl.pallas_call(
        kernel,
        out_shape=jax.ShapeDtypeStruct((1, n), jnp.float32),
    )(*arrays)
    return out.reshape(n)


# ----------------------------------------------------------------------------
# Parameter initialization (MSRInitializer semantics, deterministic).
# ----------------------------------------------------------------------------
def init_discriminator_params(key, width_per_stage, card_per_stage,
                              blocks_per_stage, expansion, kernel_size):
    vsp = float(sum(blocks_per_stage))
    act_gain = ACT_GAIN * vsp ** (-1.0 / (2 * 3 - 2))
    kit = iter(jax.random.split(key, 256))

    def conv_w(out_c, in_c_per_group, kh, kw, gain):
        fan_in = in_c_per_group * kh * kw
        std = gain / math.sqrt(fan_in)
        return std * jax.random.normal(next(kit), (out_c, in_c_per_group, kh, kw),
                                       jnp.float32)

    def linear_w(out_f, in_f, gain):
        std = gain / math.sqrt(in_f)
        return std * jax.random.normal(next(kit), (out_f, in_f), jnp.float32)

    params = {'extraction': conv_w(width_per_stage[0], 3, 1, 1, 1.0), 'stages': []}
    n_stages = len(width_per_stage)
    for s in range(n_stages):
        in_c = width_per_stage[s]
        out_c = width_per_stage[s + 1] if s + 1 < n_stages else 1
        card = card_per_stage[s]
        exp_c = in_c * expansion
        blocks = []
        for _ in range(blocks_per_stage[s]):
            blocks.append({
                'w1': conv_w(exp_c, in_c, 1, 1, act_gain),
                'b1': jnp.zeros((exp_c,), jnp.float32),
                'w2': conv_w(exp_c, exp_c // card, kernel_size, kernel_size, act_gain),
                'b2': jnp.zeros((exp_c,), jnp.float32),
                'w3': conv_w(in_c, exp_c, 1, 1, 0.0),   # ActivationGain=0 -> zeros
            })
        if s + 1 < n_stages:
            trans = {'type': 'down',
                     'w': conv_w(out_c, in_c, 1, 1, 1.0) if in_c != out_c else None}
        else:
            trans = {'type': 'basis',
                     'wb': conv_w(in_c, 1, 4, 4, 1.0),
                     'wl': linear_w(out_c, in_c, 1.0)}
        params['stages'].append({'cardinality': card, 'blocks': blocks,
                                 'transition': trans})
    return params


# ----------------------------------------------------------------------------
# Pure-JAX reference (no Pallas) mirroring the PyTorch module op-by-op, used
# only to validate the fused kernel numerically in the smoke test.
# ----------------------------------------------------------------------------
def _reference_forward(params, x_nchw):
    def conv1x1(x, w):
        return jnp.einsum('nhwc,oc->nhwo', x, w.reshape(w.shape[0], w.shape[1]),
                          precision='highest')

    def bias_act(x, b):
        y = x + b.reshape(1, 1, 1, -1)
        return jnp.where(y >= 0, y, NEG_SLOPE * y) * ACT_GAIN

    def grouped_conv(x, w, groups):
        n, h, wd, c = x.shape
        cout, cin_g, k, _ = w.shape
        cout_g = cout // groups
        pad = (k - 1) // 2
        xp = jnp.pad(x, ((0, 0), (pad, pad), (pad, pad), (0, 0)))
        patches = jnp.stack([xp[:, ky:ky + h, kx:kx + wd, :]
                             for ky in range(k) for kx in range(k)], axis=3)
        outs = []
        for g in range(groups):
            pg = patches[..., g * cin_g:(g + 1) * cin_g].reshape(n, h, wd, k * k * cin_g)
            wg = jnp.transpose(w[g * cout_g:(g + 1) * cout_g],
                               (2, 3, 1, 0)).reshape(k * k * cin_g, cout_g)
            outs.append(jnp.einsum('nhwk,ko->nhwo', pg, wg, precision='highest'))
        return jnp.concatenate(outs, axis=-1)

    def downsample(x):
        n, h, wd, c = x.shape
        ho, wo = h // 2, wd // 2
        filt = np.outer(_F1D, _F1D) / 16.0
        xp = jnp.pad(x, ((0, 0), (1, 0), (1, 0), (0, 0)))
        acc = jnp.zeros((n, ho, wo, c), x.dtype)
        for ky in range(3):
            for kx in range(3):
                acc = acc + filt[ky, kx] * xp[:, ky:ky + 2 * ho:2, kx:kx + 2 * wo:2, :]
        return acc

    x = jnp.transpose(x_nchw.astype(jnp.float32), (0, 2, 3, 1))
    x = conv1x1(x, params['extraction'])
    for stage in params['stages']:
        card = int(stage['cardinality'])
        for blk in stage['blocks']:
            y = bias_act(conv1x1(x, blk['w1']), blk['b1'])
            y = bias_act(grouped_conv(y, blk['w2'], card), blk['b2'])
            x = x + conv1x1(y, blk['w3'])
        t = stage['transition']
        if t['type'] == 'down':
            x = downsample(x)
            if t['w'] is not None:
                x = conv1x1(x, t['w'])
        else:
            n, h, wd, c = x.shape
            wb = t['wb']
            basis = jnp.sum(x.reshape(n, h * wd, c)
                            * jnp.transpose(wb.reshape(c, h * wd), (1, 0))[None],
                            axis=1)
            x = jnp.einsum('nc,oc->no', basis, t['wl'], precision='highest')
    return x.reshape(x.shape[0])


# ----------------------------------------------------------------------------
if __name__ == "__main__":
    key = jax.random.PRNGKey(0)
    pkey, xkey, tkey = jax.random.split(key, 3)
    params = init_discriminator_params(pkey, WIDTH_PER_STAGE, CARD_PER_STAGE,
                                       BLOCKS_PER_STAGE, EXPANSION, KERNEL_SIZE)

    # Test-only perturbation: per MSRInitializer the reference init has w3 == 0
    # and biases == 0, which would make the smoke test insensitive to the
    # grouped-conv / bias paths.  Give them nonzero values so every kernel path
    # is numerically exercised (forward semantics are unchanged).
    tkeys = iter(jax.random.split(tkey, 64))
    for stage in params['stages']:
        for blk in stage['blocks']:
            blk['w3'] = 0.2 * jax.random.normal(next(tkeys), blk['w3'].shape, jnp.float32)
            blk['b1'] = 0.5 * jax.random.normal(next(tkeys), blk['b1'].shape, jnp.float32)
            blk['b2'] = 0.5 * jax.random.normal(next(tkeys), blk['b2'].shape, jnp.float32)

    # PyTorch-style NCHW input: batch=2, 3 channels, 8x8 spatial
    # (8x8 -> downsample -> 4x4 -> DiscriminativeBasis 4x4 -> scalar per sample).
    x = jax.random.normal(xkey, (2, 3, 8, 8), jnp.float32)

    fwd = jax.jit(functools.partial(discriminator_forward, params))
    out = jax.block_until_ready(fwd(x))
    assert out.shape == (2,), out.shape
    assert bool(jnp.all(jnp.isfinite(out)))

    ref = jax.block_until_ready(_reference_forward(params, x))
    assert bool(jnp.allclose(out, ref, rtol=2e-2, atol=2e-2)), (out, ref)

    print("KERNEL_OK")
</pallas_src>

<mosaic_0001>
module attributes {stable_mosaic.version = 11 : i64} {
  func.func @kernel(%arg0: memref<3x128xf32, #tpu.memory_space<vmem>>, %arg1: memref<8x3xf32, #tpu.memory_space<vmem>>, %arg2: memref<9x128x128xf32, #tpu.memory_space<vmem>>, %arg3: memref<16x8xf32, #tpu.memory_space<vmem>>, %arg4: memref<16x1xf32, #tpu.memory_space<vmem>>, %arg5: memref<9x16x16xf32, #tpu.memory_space<vmem>>, %arg6: memref<16x1xf32, #tpu.memory_space<vmem>>, %arg7: memref<8x16xf32, #tpu.memory_space<vmem>>, %arg8: memref<128x32xf32, #tpu.memory_space<vmem>>, %arg9: memref<16x8xf32, #tpu.memory_space<vmem>>, %arg10: memref<9x32x32xf32, #tpu.memory_space<vmem>>, %arg11: memref<32x16xf32, #tpu.memory_space<vmem>>, %arg12: memref<32x1xf32, #tpu.memory_space<vmem>>, %arg13: memref<9x32x32xf32, #tpu.memory_space<vmem>>, %arg14: memref<32x1xf32, #tpu.memory_space<vmem>>, %arg15: memref<16x32xf32, #tpu.memory_space<vmem>>, %arg16: memref<16x32xf32, #tpu.memory_space<vmem>>, %arg17: memref<32x2xf32, #tpu.memory_space<vmem>>, %arg18: memref<1x16xf32, #tpu.memory_space<vmem>>, %arg19: memref<1x2xf32, #tpu.memory_space<vmem>>) attributes {dimension_semantics = [], scalar_prefetch = 0 : i64, scratch_operands = 0 : i64, tpu.core_type = #tpu.core_type<tc>} {
    %c0 = arith.constant 0 : index
    %c0_0 = arith.constant 0 : index
    %0 = vector.load %arg0[%c0, %c0_0] : memref<3x128xf32, #tpu.memory_space<vmem>>, vector<3x128xf32>
    %c0_1 = arith.constant 0 : index
    %c0_2 = arith.constant 0 : index
    %1 = vector.load %arg1[%c0_1, %c0_2] : memref<8x3xf32, #tpu.memory_space<vmem>>, vector<8x3xf32>
    %cst = arith.constant dense<0.000000e+00> : vector<8x128xf32>
    %2 = tpu.matmul %1, %0, %cst {dimension_numbers = #tpu.dot_dimension_numbers<[1], [0], [0], [1], [0, 0, 1, 1], [], []>} : vector<8x3xf32>, vector<3x128xf32>, vector<8x128xf32> -> vector<8x128xf32>
    %c0_3 = arith.constant 0 : index
    %c0_4 = arith.constant 0 : index
    %3 = vector.load %arg3[%c0_3, %c0_4] : memref<16x8xf32, #tpu.memory_space<vmem>>, vector<16x8xf32>
    %cst_5 = arith.constant dense<0.000000e+00> : vector<16x128xf32>
    %4 = tpu.matmul %3, %2, %cst_5 {dimension_numbers = #tpu.dot_dimension_numbers<[1], [0], [0], [1], [0, 0, 1, 1], [], []>} : vector<16x8xf32>, vector<8x128xf32>, vector<16x128xf32> -> vector<16x128xf32>
    %c0_6 = arith.constant 0 : index
    %c0_7 = arith.constant 0 : index
    %5 = vector.load %arg4[%c0_6, %c0_7] : memref<16x1xf32, #tpu.memory_space<vmem>>, vector<16x1xf32>
    %6 = vector.broadcast %5 : vector<16x1xf32> to vector<16x128xf32>
    %7 = arith.addf %4, %6 : vector<16x128xf32>
    %cst_8 = arith.constant 0.000000e+00 : f32
    %8 = vector.broadcast %cst_8 : f32 to vector<16x128xf32>
    %9 = arith.cmpf oge, %7, %8 : vector<16x128xf32>
    %cst_9 = arith.constant 2.000000e-01 : f32
    %10 = vector.broadcast %cst_9 : f32 to vector<16x128xf32>
    %11 = arith.mulf %10, %7 : vector<16x128xf32>
    %12 = arith.select %9, %7, %11 : vector<16x128xi1>, vector<16x128xf32>
    %cst_10 = arith.constant 1.41421354 : f32
    %13 = vector.broadcast %cst_10 : f32 to vector<16x128xf32>
    %14 = arith.mulf %12, %13 : vector<16x128xf32>
    %c0_11 = arith.constant 0 : index
    %c0_12 = arith.constant 0 : index
    %c0_13 = arith.constant 0 : index
    %15 = vector.load %arg2[%c0_11, %c0_12, %c0_13] : memref<9x128x128xf32, #tpu.memory_space<vmem>>, vector<1x128x128xf32>
    %16 = vector.shape_cast %15 : vector<1x128x128xf32> to vector<128x128xf32>
    %cst_14 = arith.constant dense<0.000000e+00> : vector<16x128xf32>
    %17 = tpu.matmul %14, %16, %cst_14 {dimension_numbers = #tpu.dot_dimension_numbers<[1], [0], [0], [1], [0, 0, 1, 1], [], []>} : vector<16x128xf32>, vector<128x128xf32>, vector<16x128xf32> -> vector<16x128xf32>
    %c0_15 = arith.constant 0 : index
    %c0_16 = arith.constant 0 : index
    %c0_17 = arith.constant 0 : index
    %18 = vector.load %arg5[%c0_15, %c0_16, %c0_17] : memref<9x16x16xf32, #tpu.memory_space<vmem>>, vector<1x16x16xf32>
    %19 = vector.shape_cast %18 : vector<1x16x16xf32> to vector<16x16xf32>
    %cst_18 = arith.constant dense<0.000000e+00> : vector<16x128xf32>
    %20 = tpu.matmul %19, %17, %cst_18 {dimension_numbers = #tpu.dot_dimension_numbers<[1], [0], [0], [1], [0, 0, 1, 1], [], []>} : vector<16x16xf32>, vector<16x128xf32>, vector<16x128xf32> -> vector<16x128xf32>
    %c1 = arith.constant 1 : index
    %c0_19 = arith.constant 0 : index
    %c0_20 = arith.constant 0 : index
    %21 = vector.load %arg2[%c1, %c0_19, %c0_20] : memref<9x128x128xf32, #tpu.memory_space<vmem>>, vector<1x128x128xf32>
    %22 = vector.shape_cast %21 : vector<1x128x128xf32> to vector<128x128xf32>
    %cst_21 = arith.constant dense<0.000000e+00> : vector<16x128xf32>
    %23 = tpu.matmul %14, %22, %cst_21 {dimension_numbers = #tpu.dot_dimension_numbers<[1], [0], [0], [1], [0, 0, 1, 1], [], []>} : vector<16x128xf32>, vector<128x128xf32>, vector<16x128xf32> -> vector<16x128xf32>
    %c1_22 = arith.constant 1 : index
    %c0_23 = arith.constant 0 : index
    %c0_24 = arith.constant 0 : index
    %24 = vector.load %arg5[%c1_22, %c0_23, %c0_24] : memref<9x16x16xf32, #tpu.memory_space<vmem>>, vector<1x16x16xf32>
    %25 = vector.shape_cast %24 : vector<1x16x16xf32> to vector<16x16xf32>
    %cst_25 = arith.constant dense<0.000000e+00> : vector<16x128xf32>
    %26 = tpu.matmul %25, %23, %cst_25 {dimension_numbers = #tpu.dot_dimension_numbers<[1], [0], [0], [1], [0, 0, 1, 1], [], []>} : vector<16x16xf32>, vector<16x128xf32>, vector<16x128xf32> -> vector<16x128xf32>
    %27 = arith.addf %20, %26 : vector<16x128xf32>
    %c2 = arith.constant 2 : index
    %c0_26 = arith.constant 0 : index
    %c0_27 = arith.constant 0 : index
    %28 = vector.load %arg2[%c2, %c0_26, %c0_27] : memref<9x128x128xf32, #tpu.memory_space<vmem>>, vector<1x128x128xf32>
    %29 = vector.shape_cast %28 : vector<1x128x128xf32> to vector<128x128xf32>
    %cst_28 = arith.constant dense<0.000000e+00> : vector<16x128xf32>
    %30 = tpu.matmul %14, %29, %cst_28 {dimension_numbers = #tpu.dot_dimension_numbers<[1], [0], [0], [1], [0, 0, 1, 1], [], []>} : vector<16x128xf32>, vector<128x128xf32>, vector<16x128xf32> -> vector<16x128xf32>
    %c2_29 = arith.constant 2 : index
    %c0_30 = arith.constant 0 : index
    %c0_31 = arith.constant 0 : index
    %31 = vector.load %arg5[%c2_29, %c0_30, %c0_31] : memref<9x16x16xf32, #tpu.memory_space<vmem>>, vector<1x16x16xf32>
    %32 = vector.shape_cast %31 : vector<1x16x16xf32> to vector<16x16xf32>
    %cst_32 = arith.constant dense<0.000000e+00> : vector<16x128xf32>
    %33 = tpu.matmul %32, %30, %cst_32 {dimension_numbers = #tpu.dot_dimension_numbers<[1], [0], [0], [1], [0, 0, 1, 1], [], []>} : vector<16x16xf32>, vector<16x128xf32>, vector<16x128xf32> -> vector<16x128xf32>
    %34 = arith.addf %27, %33 : vector<16x128xf32>
    %c3 = arith.constant 3 : index
    %c0_33 = arith.constant 0 : index
    %c0_34 = arith.constant 0 : index
    %35 = vector.load %arg2[%c3, %c0_33, %c0_34] : memref<9x128x128xf32, #tpu.memory_space<vmem>>, vector<1x128x128xf32>
    %36 = vector.shape_cast %35 : vector<1x128x128xf32> to vector<128x128xf32>
    %cst_35 = arith.constant dense<0.000000e+00> : vector<16x128xf32>
    %37 = tpu.matmul %14, %36, %cst_35 {dimension_numbers = #tpu.dot_dimension_numbers<[1], [0], [0], [1], [0, 0, 1, 1], [], []>} : vector<16x128xf32>, vector<128x128xf32>, vector<16x128xf32> -> vector<16x128xf32>
    %c3_36 = arith.constant 3 : index
    %c0_37 = arith.constant 0 : index
    %c0_38 = arith.constant 0 : index
    %38 = vector.load %arg5[%c3_36, %c0_37, %c0_38] : memref<9x16x16xf32, #tpu.memory_space<vmem>>, vector<1x16x16xf32>
    %39 = vector.shape_cast %38 : vector<1x16x16xf32> to vector<16x16xf32>
    %cst_39 = arith.constant dense<0.000000e+00> : vector<16x128xf32>
    %40 = tpu.matmul %39, %37, %cst_39 {dimension_numbers = #tpu.dot_dimension_numbers<[1], [0], [0], [1], [0, 0, 1, 1], [], []>} : vector<16x16xf32>, vector<16x128xf32>, vector<16x128xf32> -> vector<16x128xf32>
    %41 = arith.addf %34, %40 : vector<16x128xf32>
    %c4 = arith.constant 4 : index
    %c0_40 = arith.constant 0 : index
    %c0_41 = arith.constant 0 : index
    %42 = vector.load %arg2[%c4, %c0_40, %c0_41] : memref<9x128x128xf32, #tpu.memory_space<vmem>>, vector<1x128x128xf32>
    %43 = vector.shape_cast %42 : vector<1x128x128xf32> to vector<128x128xf32>
    %cst_42 = arith.constant dense<0.000000e+00> : vector<16x128xf32>
    %44 = tpu.matmul %14, %43, %cst_42 {dimension_numbers = #tpu.dot_dimension_numbers<[1], [0], [0], [1], [0, 0, 1, 1], [], []>} : vector<16x128xf32>, vector<128x128xf32>, vector<16x128xf32> -> vector<16x128xf32>
    %c4_43 = arith.constant 4 : index
    %c0_44 = arith.constant 0 : index
    %c0_45 = arith.constant 0 : index
    %45 = vector.load %arg5[%c4_43, %c0_44, %c0_45] : memref<9x16x16xf32, #tpu.memory_space<vmem>>, vector<1x16x16xf32>
    %46 = vector.shape_cast %45 : vector<1x16x16xf32> to vector<16x16xf32>
    %cst_46 = arith.constant dense<0.000000e+00> : vector<16x128xf32>
    %47 = tpu.matmul %46, %44, %cst_46 {dimension_numbers = #tpu.dot_dimension_numbers<[1], [0], [0], [1], [0, 0, 1, 1], [], []>} : vector<16x16xf32>, vector<16x128xf32>, vector<16x128xf32> -> vector<16x128xf32>
    %48 = arith.addf %41, %47 : vector<16x128xf32>
    %c5 = arith.constant 5 : index
    %c0_47 = arith.constant 0 : index
    %c0_48 = arith.constant 0 : index
    %49 = vector.load %arg2[%c5, %c0_47, %c0_48] : memref<9x128x128xf32, #tpu.memory_space<vmem>>, vector<1x128x128xf32>
    %50 = vector.shape_cast %49 : vector<1x128x128xf32> to vector<128x128xf32>
    %cst_49 = arith.constant dense<0.000000e+00> : vector<16x128xf32>
    %51 = tpu.matmul %14, %50, %cst_49 {dimension_numbers = #tpu.dot_dimension_numbers<[1], [0], [0], [1], [0, 0, 1, 1], [], []>} : vector<16x128xf32>, vector<128x128xf32>, vector<16x128xf32> -> vector<16x128xf32>
    %c5_50 = arith.constant 5 : index
    %c0_51 = arith.constant 0 : index
    %c0_52 = arith.constant 0 : index
    %52 = vector.load %arg5[%c5_50, %c0_51, %c0_52] : memref<9x16x16xf32, #tpu.memory_space<vmem>>, vector<1x16x16xf32>
    %53 = vector.shape_cast %52 : vector<1x16x16xf32> to vector<16x16xf32>
    %cst_53 = arith.constant dense<0.000000e+00> : vector<16x128xf32>
    %54 = tpu.matmul %53, %51, %cst_53 {dimension_numbers = #tpu.dot_dimension_numbers<[1], [0], [0], [1], [0, 0, 1, 1], [], []>} : vector<16x16xf32>, vector<16x128xf32>, vector<16x128xf32> -> vector<16x128xf32>
    %55 = arith.addf %48, %54 : vector<16x128xf32>
    %c6 = arith.constant 6 : index
    %c0_54 = arith.constant 0 : index
    %c0_55 = arith.constant 0 : index
    %56 = vector.load %arg2[%c6, %c0_54, %c0_55] : memref<9x128x128xf32, #tpu.memory_space<vmem>>, vector<1x128x128xf32>
    %57 = vector.shape_cast %56 : vector<1x128x128xf32> to vector<128x128xf32>
    %cst_56 = arith.constant dense<0.000000e+00> : vector<16x128xf32>
    %58 = tpu.matmul %14, %57, %cst_56 {dimension_numbers = #tpu.dot_dimension_numbers<[1], [0], [0], [1], [0, 0, 1, 1], [], []>} : vector<16x128xf32>, vector<128x128xf32>, vector<16x128xf32> -> vector<16x128xf32>
    %c6_57 = arith.constant 6 : index
    %c0_58 = arith.constant 0 : index
    %c0_59 = arith.constant 0 : index
    %59 = vector.load %arg5[%c6_57, %c0_58, %c0_59] : memref<9x16x16xf32, #tpu.memory_space<vmem>>, vector<1x16x16xf32>
    %60 = vector.shape_cast %59 : vector<1x16x16xf32> to vector<16x16xf32>
    %cst_60 = arith.constant dense<0.000000e+00> : vector<16x128xf32>
    %61 = tpu.matmul %60, %58, %cst_60 {dimension_numbers = #tpu.dot_dimension_numbers<[1], [0], [0], [1], [0, 0, 1, 1], [], []>} : vector<16x16xf32>, vector<16x128xf32>, vector<16x128xf32> -> vector<16x128xf32>
    %62 = arith.addf %55, %61 : vector<16x128xf32>
    %c7 = arith.constant 7 : index
    %c0_61 = arith.constant 0 : index
    %c0_62 = arith.constant 0 : index
    %63 = vector.load %arg2[%c7, %c0_61, %c0_62] : memref<9x128x128xf32, #tpu.memory_space<vmem>>, vector<1x128x128xf32>
    %64 = vector.shape_cast %63 : vector<1x128x128xf32> to vector<128x128xf32>
    %cst_63 = arith.constant dense<0.000000e+00> : vector<16x128xf32>
    %65 = tpu.matmul %14, %64, %cst_63 {dimension_numbers = #tpu.dot_dimension_numbers<[1], [0], [0], [1], [0, 0, 1, 1], [], []>} : vector<16x128xf32>, vector<128x128xf32>, vector<16x128xf32> -> vector<16x128xf32>
    %c7_64 = arith.constant 7 : index
    %c0_65 = arith.constant 0 : index
    %c0_66 = arith.constant 0 : index
    %66 = vector.load %arg5[%c7_64, %c0_65, %c0_66] : memref<9x16x16xf32, #tpu.memory_space<vmem>>, vector<1x16x16xf32>
    %67 = vector.shape_cast %66 : vector<1x16x16xf32> to vector<16x16xf32>
    %cst_67 = arith.constant dense<0.000000e+00> : vector<16x128xf32>
    %68 = tpu.matmul %67, %65, %cst_67 {dimension_numbers = #tpu.dot_dimension_numbers<[1], [0], [0], [1], [0, 0, 1, 1], [], []>} : vector<16x16xf32>, vector<16x128xf32>, vector<16x128xf32> -> vector<16x128xf32>
    %69 = arith.addf %62, %68 : vector<16x128xf32>
    %c8 = arith.constant 8 : index
    %c0_68 = arith.constant 0 : index
    %c0_69 = arith.constant 0 : index
    %70 = vector.load %arg2[%c8, %c0_68, %c0_69] : memref<9x128x128xf32, #tpu.memory_space<vmem>>, vector<1x128x128xf32>
    %71 = vector.shape_cast %70 : vector<1x128x128xf32> to vector<128x128xf32>
    %cst_70 = arith.constant dense<0.000000e+00> : vector<16x128xf32>
    %72 = tpu.matmul %14, %71, %cst_70 {dimension_numbers = #tpu.dot_dimension_numbers<[1], [0], [0], [1], [0, 0, 1, 1], [], []>} : vector<16x128xf32>, vector<128x128xf32>, vector<16x128xf32> -> vector<16x128xf32>
    %c8_71 = arith.constant 8 : index
    %c0_72 = arith.constant 0 : index
    %c0_73 = arith.constant 0 : index
    %73 = vector.load %arg5[%c8_71, %c0_72, %c0_73] : memref<9x16x16xf32, #tpu.memory_space<vmem>>, vector<1x16x16xf32>
    %74 = vector.shape_cast %73 : vector<1x16x16xf32> to vector<16x16xf32>
    %cst_74 = arith.constant dense<0.000000e+00> : vector<16x128xf32>
    %75 = tpu.matmul %74, %72, %cst_74 {dimension_numbers = #tpu.dot_dimension_numbers<[1], [0], [0], [1], [0, 0, 1, 1], [], []>} : vector<16x16xf32>, vector<16x128xf32>, vector<16x128xf32> -> vector<16x128xf32>
    %76 = arith.addf %69, %75 : vector<16x128xf32>
    %c0_75 = arith.constant 0 : index
    %c0_76 = arith.constant 0 : index
    %77 = vector.load %arg6[%c0_75, %c0_76] : memref<16x1xf32, #tpu.memory_space<vmem>>, vector<16x1xf32>
    %78 = vector.broadcast %77 : vector<16x1xf32> to vector<16x128xf32>
    %79 = arith.addf %76, %78 : vector<16x128xf32>
    %cst_77 = arith.constant 0.000000e+00 : f32
    %80 = vector.broadcast %cst_77 : f32 to vector<16x128xf32>
    %81 = arith.cmpf oge, %79, %80 : vector<16x128xf32>
    %cst_78 = arith.constant 2.000000e-01 : f32
    %82 = vector.broadcast %cst_78 : f32 to vector<16x128xf32>
    %83 = arith.mulf %82, %79 : vector<16x128xf32>
    %84 = arith.select %81, %79, %83 : vector<16x128xi1>, vector<16x128xf32>
    %cst_79 = arith.constant 1.41421354 : f32
    %85 = vector.broadcast %cst_79 : f32 to vector<16x128xf32>
    %86 = arith.mulf %84, %85 : vector<16x128xf32>
    %c0_80 = arith.constant 0 : index
    %c0_81 = arith.constant 0 : index
    %87 = vector.load %arg7[%c0_80, %c0_81] : memref<8x16xf32, #tpu.memory_space<vmem>>, vector<8x16xf32>
    %cst_82 = arith.constant dense<0.000000e+00> : vector<8x128xf32>
    %88 = tpu.matmul %87, %86, %cst_82 {dimension_numbers = #tpu.dot_dimension_numbers<[1], [0], [0], [1], [0, 0, 1, 1], [], []>} : vector<8x16xf32>, vector<16x128xf32>, vector<8x128xf32> -> vector<8x128xf32>
    %89 = arith.addf %2, %88 : vector<8x128xf32>
    %c0_83 = arith.constant 0 : index
    %c0_84 = arith.constant 0 : index
    %90 = vector.load %arg8[%c0_83, %c0_84] : memref<128x32xf32, #tpu.memory_space<vmem>>, vector<128x32xf32>
    %cst_85 = arith.constant dense<0.000000e+00> : vector<8x32xf32>
    %91 = tpu.matmul %89, %90, %cst_85 {dimension_numbers = #tpu.dot_dimension_numbers<[1], [0], [0], [1], [0, 0, 1, 1], [], []>} : vector<8x128xf32>, vector<128x32xf32>, vector<8x32xf32> -> vector<8x32xf32>
    %c0_86 = arith.constant 0 : index
    %c0_87 = arith.constant 0 : index
    %92 = vector.load %arg9[%c0_86, %c0_87] : memref<16x8xf32, #tpu.memory_space<vmem>>, vector<16x8xf32>
    %cst_88 = arith.constant dense<0.000000e+00> : vector<16x32xf32>
    %93 = tpu.matmul %92, %91, %cst_88 {dimension_numbers = #tpu.dot_dimension_numbers<[1], [0], [0], [1], [0, 0, 1, 1], [], []>} : vector<16x8xf32>, vector<8x32xf32>, vector<16x32xf32> -> vector<16x32xf32>
    %c0_89 = arith.constant 0 : index
    %c0_90 = arith.constant 0 : index
    %94 = vector.load %arg11[%c0_89, %c0_90] : memref<32x16xf32, #tpu.memory_space<vmem>>, vector<32x16xf32>
    %cst_91 = arith.constant dense<0.000000e+00> : vector<32x32xf32>
    %95 = tpu.matmul %94, %93, %cst_91 {dimension_numbers = #tpu.dot_dimension_numbers<[1], [0], [0], [1], [0, 0, 1, 1], [], []>} : vector<32x16xf32>, vector<16x32xf32>, vector<32x32xf32> -> vector<32x32xf32>
    %c0_92 = arith.constant 0 : index
    %c0_93 = arith.constant 0 : index
    %96 = vector.load %arg12[%c0_92, %c0_93] : memref<32x1xf32, #tpu.memory_space<vmem>>, vector<32x1xf32>
    %97 = vector.broadcast %96 : vector<32x1xf32> to vector<32x32xf32>
    %98 = arith.addf %95, %97 : vector<32x32xf32>
    %cst_94 = arith.constant 0.000000e+00 : f32
    %99 = vector.broadcast %cst_94 : f32 to vector<32x32xf32>
    %100 = arith.cmpf oge, %98, %99 : vector<32x32xf32>
    %cst_95 = arith.constant 2.000000e-01 : f32
    %101 = vector.broadcast %cst_95 : f32 to vector<32x32xf32>
    %102 = arith.mulf %101, %98 : vector<32x32xf32>
    %103 = arith.select %100, %98, %102 : vector<32x32xi1>, vector<32x32xf32>
    %cst_96 = arith.constant 1.41421354 : f32
    %104 = vector.broadcast %cst_96 : f32 to vector<32x32xf32>
    %105 = arith.mulf %103, %104 : vector<32x32xf32>
    %c0_97 = arith.constant 0 : index
    %c0_98 = arith.constant 0 : index
    %c0_99 = arith.constant 0 : index
    %106 = vector.load %arg10[%c0_97, %c0_98, %c0_99] : memref<9x32x32xf32, #tpu.memory_space<vmem>>, vector<1x32x32xf32>
    %107 = vector.shape_cast %106 : vector<1x32x32xf32> to vector<32x32xf32>
    %cst_100 = arith.constant dense<0.000000e+00> : vector<32x32xf32>
    %108 = tpu.matmul %105, %107, %cst_100 {dimension_numbers = #tpu.dot_dimension_numbers<[1], [0], [0], [1], [0, 0, 1, 1], [], []>} : vector<32x32xf32>, vector<32x32xf32>, vector<32x32xf32> -> vector<32x32xf32>
    %c0_101 = arith.constant 0 : index
    %c0_102 = arith.constant 0 : index
    %c0_103 = arith.constant 0 : index
    %109 = vector.load %arg13[%c0_101, %c0_102, %c0_103] : memref<9x32x32xf32, #tpu.memory_space<vmem>>, vector<1x32x32xf32>
    %110 = vector.shape_cast %109 : vector<1x32x32xf32> to vector<32x32xf32>
    %cst_104 = arith.constant dense<0.000000e+00> : vector<32x32xf32>
    %111 = tpu.matmul %110, %108, %cst_104 {dimension_numbers = #tpu.dot_dimension_numbers<[1], [0], [0], [1], [0, 0, 1, 1], [], []>} : vector<32x32xf32>, vector<32x32xf32>, vector<32x32xf32> -> vector<32x32xf32>
    %c1_105 = arith.constant 1 : index
    %c0_106 = arith.constant 0 : index
    %c0_107 = arith.constant 0 : index
    %112 = vector.load %arg10[%c1_105, %c0_106, %c0_107] : memref<9x32x32xf32, #tpu.memory_space<vmem>>, vector<1x32x32xf32>
    %113 = vector.shape_cast %112 : vector<1x32x32xf32> to vector<32x32xf32>
    %cst_108 = arith.constant dense<0.000000e+00> : vector<32x32xf32>
    %114 = tpu.matmul %105, %113, %cst_108 {dimension_numbers = #tpu.dot_dimension_numbers<[1], [0], [0], [1], [0, 0, 1, 1], [], []>} : vector<32x32xf32>, vector<32x32xf32>, vector<32x32xf32> -> vector<32x32xf32>
    %c1_109 = arith.constant 1 : index
    %c0_110 = arith.constant 0 : index
    %c0_111 = arith.constant 0 : index
    %115 = vector.load %arg13[%c1_109, %c0_110, %c0_111] : memref<9x32x32xf32, #tpu.memory_space<vmem>>, vector<1x32x32xf32>
    %116 = vector.shape_cast %115 : vector<1x32x32xf32> to vector<32x32xf32>
    %cst_112 = arith.constant dense<0.000000e+00> : vector<32x32xf32>
    %117 = tpu.matmul %116, %114, %cst_112 {dimension_numbers = #tpu.dot_dimension_numbers<[1], [0], [0], [1], [0, 0, 1, 1], [], []>} : vector<32x32xf32>, vector<32x32xf32>, vector<32x32xf32> -> vector<32x32xf32>
    %118 = arith.addf %111, %117 : vector<32x32xf32>
    %c2_113 = arith.constant 2 : index
    %c0_114 = arith.constant 0 : index
    %c0_115 = arith.constant 0 : index
    %119 = vector.load %arg10[%c2_113, %c0_114, %c0_115] : memref<9x32x32xf32, #tpu.memory_space<vmem>>, vector<1x32x32xf32>
    %120 = vector.shape_cast %119 : vector<1x32x32xf32> to vector<32x32xf32>
    %cst_116 = arith.constant dense<0.000000e+00> : vector<32x32xf32>
    %121 = tpu.matmul %105, %120, %cst_116 {dimension_numbers = #tpu.dot_dimension_numbers<[1], [0], [0], [1], [0, 0, 1, 1], [], []>} : vector<32x32xf32>, vector<32x32xf32>, vector<32x32xf32> -> vector<32x32xf32>
    %c2_117 = arith.constant 2 : index
    %c0_118 = arith.constant 0 : index
    %c0_119 = arith.constant 0 : index
    %122 = vector.load %arg13[%c2_117, %c0_118, %c0_119] : memref<9x32x32xf32, #tpu.memory_space<vmem>>, vector<1x32x32xf32>
    %123 = vector.shape_cast %122 : vector<1x32x32xf32> to vector<32x32xf32>
    %cst_120 = arith.constant dense<0.000000e+00> : vector<32x32xf32>
    %124 = tpu.matmul %123, %121, %cst_120 {dimension_numbers = #tpu.dot_dimension_numbers<[1], [0], [0], [1], [0, 0, 1, 1], [], []>} : vector<32x32xf32>, vector<32x32xf32>, vector<32x32xf32> -> vector<32x32xf32>
    %125 = arith.addf %118, %124 : vector<32x32xf32>
    %c3_121 = arith.constant 3 : index
    %c0_122 = arith.constant 0 : index
    %c0_123 = arith.constant 0 : index
    %126 = vector.load %arg10[%c3_121, %c0_122, %c0_123] : memref<9x32x32xf32, #tpu.memory_space<vmem>>, vector<1x32x32xf32>
    %127 = vector.shape_cast %126 : vector<1x32x32xf32> to vector<32x32xf32>
    %cst_124 = arith.constant dense<0.000000e+00> : vector<32x32xf32>
    %128 = tpu.matmul %105, %127, %cst_124 {dimension_numbers = #tpu.dot_dimension_numbers<[1], [0], [0], [1], [0, 0, 1, 1], [], []>} : vector<32x32xf32>, vector<32x32xf32>, vector<32x32xf32> -> vector<32x32xf32>
    %c3_125 = arith.constant 3 : index
    %c0_126 = arith.constant 0 : index
    %c0_127 = arith.constant 0 : index
    %129 = vector.load %arg13[%c3_125, %c0_126, %c0_127] : memref<9x32x32xf32, #tpu.memory_space<vmem>>, vector<1x32x32xf32>
    %130 = vector.shape_cast %129 : vector<1x32x32xf32> to vector<32x32xf32>
    %cst_128 = arith.constant dense<0.000000e+00> : vector<32x32xf32>
    %131 = tpu.matmul %130, %128, %cst_128 {dimension_numbers = #tpu.dot_dimension_numbers<[1], [0], [0], [1], [0, 0, 1, 1], [], []>} : vector<32x32xf32>, vector<32x32xf32>, vector<32x32xf32> -> vector<32x32xf32>
    %132 = arith.addf %125, %131 : vector<32x32xf32>
    %c4_129 = arith.constant 4 : index
    %c0_130 = arith.constant 0 : index
    %c0_131 = arith.constant 0 : index
    %133 = vector.load %arg10[%c4_129, %c0_130, %c0_131] : memref<9x32x32xf32, #tpu.memory_space<vmem>>, vector<1x32x32xf32>
    %134 = vector.shape_cast %133 : vector<1x32x32xf32> to vector<32x32xf32>
    %cst_132 = arith.constant dense<0.000000e+00> : vector<32x32xf32>
    %135 = tpu.matmul %105, %134, %cst_132 {dimension_numbers = #tpu.dot_dimension_numbers<[1], [0], [0], [1], [0, 0, 1, 1], [], []>} : vector<32x32xf32>, vector<32x32xf32>, vector<32x32xf32> -> vector<32x32xf32>
    %c4_133 = arith.constant 4 : index
    %c0_134 = arith.constant 0 : index
    %c0_135 = arith.constant 0 : index
    %136 = vector.load %arg13[%c4_133, %c0_134, %c0_135] : memref<9x32x32xf32, #tpu.memory_space<vmem>>, vector<1x32x32xf32>
    %137 = vector.shape_cast %136 : vector<1x32x32xf32> to vector<32x32xf32>
    %cst_136 = arith.constant dense<0.000000e+00> : vector<32x32xf32>
    %138 = tpu.matmul %137, %135, %cst_136 {dimension_numbers = #tpu.dot_dimension_numbers<[1], [0], [0], [1], [0, 0, 1, 1], [], []>} : vector<32x32xf32>, vector<32x32xf32>, vector<32x32xf32> -> vector<32x32xf32>
    %139 = arith.addf %132, %138 : vector<32x32xf32>
    %c5_137 = arith.constant 5 : index
    %c0_138 = arith.constant 0 : index
    %c0_139 = arith.constant 0 : index
    %140 = vector.load %arg10[%c5_137, %c0_138, %c0_139] : memref<9x32x32xf32, #tpu.memory_space<vmem>>, vector<1x32x32xf32>
    %141 = vector.shape_cast %140 : vector<1x32x32xf32> to vector<32x32xf32>
    %cst_140 = arith.constant dense<0.000000e+00> : vector<32x32xf32>
    %142 = tpu.matmul %105, %141, %cst_140 {dimension_numbers = #tpu.dot_dimension_numbers<[1], [0], [0], [1], [0, 0, 1, 1], [], []>} : vector<32x32xf32>, vector<32x32xf32>, vector<32x32xf32> -> vector<32x32xf32>
    %c5_141 = arith.constant 5 : index
    %c0_142 = arith.constant 0 : index
    %c0_143 = arith.constant 0 : index
    %143 = vector.load %arg13[%c5_141, %c0_142, %c0_143] : memref<9x32x32xf32, #tpu.memory_space<vmem>>, vector<1x32x32xf32>
    %144 = vector.shape_cast %143 : vector<1x32x32xf32> to vector<32x32xf32>
    %cst_144 = arith.constant dense<0.000000e+00> : vector<32x32xf32>
    %145 = tpu.matmul %144, %142, %cst_144 {dimension_numbers = #tpu.dot_dimension_numbers<[1], [0], [0], [1], [0, 0, 1, 1], [], []>} : vector<32x32xf32>, vector<32x32xf32>, vector<32x32xf32> -> vector<32x32xf32>
    %146 = arith.addf %139, %145 : vector<32x32xf32>
    %c6_145 = arith.constant 6 : index
    %c0_146 = arith.constant 0 : index
    %c0_147 = arith.constant 0 : index
    %147 = vector.load %arg10[%c6_145, %c0_146, %c0_147] : memref<9x32x32xf32, #tpu.memory_space<vmem>>, vector<1x32x32xf32>
    %148 = vector.shape_cast %147 : vector<1x32x32xf32> to vector<32x32xf32>
    %cst_148 = arith.constant dense<0.000000e+00> : vector<32x32xf32>
    %149 = tpu.matmul %105, %148, %cst_148 {dimension_numbers = #tpu.dot_dimension_numbers<[1], [0], [0], [1], [0, 0, 1, 1], [], []>} : vector<32x32xf32>, vector<32x32xf32>, vector<32x32xf32> -> vector<32x32xf32>
    %c6_149 = arith.constant 6 : index
    %c0_150 = arith.constant 0 : index
    %c0_151 = arith.constant 0 : index
    %150 = vector.load %arg13[%c6_149, %c0_150, %c0_151] : memref<9x32x32xf32, #tpu.memory_space<vmem>>, vector<1x32x32xf32>
    %151 = vector.shape_cast %150 : vector<1x32x32xf32> to vector<32x32xf32>
    %cst_152 = arith.constant dense<0.000000e+00> : vector<32x32xf32>
    %152 = tpu.matmul %151, %149, %cst_152 {dimension_numbers = #tpu.dot_dimension_numbers<[1], [0], [0], [1], [0, 0, 1, 1], [], []>} : vector<32x32xf32>, vector<32x32xf32>, vector<32x32xf32> -> vector<32x32xf32>
    %153 = arith.addf %146, %152 : vector<32x32xf32>
    %c7_153 = arith.constant 7 : index
    %c0_154 = arith.constant 0 : index
    %c0_155 = arith.constant 0 : index
    %154 = vector.load %arg10[%c7_153, %c0_154, %c0_155] : memref<9x32x32xf32, #tpu.memory_space<vmem>>, vector<1x32x32xf32>
    %155 = vector.shape_cast %154 : vector<1x32x32xf32> to vector<32x32xf32>
    %cst_156 = arith.constant dense<0.000000e+00> : vector<32x32xf32>
    %156 = tpu.matmul %105, %155, %cst_156 {dimension_numbers = #tpu.dot_dimension_numbers<[1], [0], [0], [1], [0, 0, 1, 1], [], []>} : vector<32x32xf32>, vector<32x32xf32>, vector<32x32xf32> -> vector<32x32xf32>
    %c7_157 = arith.constant 7 : index
    %c0_158 = arith.constant 0 : index
    %c0_159 = arith.constant 0 : index
    %157 = vector.load %arg13[%c7_157, %c0_158, %c0_159] : memref<9x32x32xf32, #tpu.memory_space<vmem>>, vector<1x32x32xf32>
    %158 = vector.shape_cast %157 : vector<1x32x32xf32> to vector<32x32xf32>
    %cst_160 = arith.constant dense<0.000000e+00> : vector<32x32xf32>
    %159 = tpu.matmul %158, %156, %cst_160 {dimension_numbers = #tpu.dot_dimension_numbers<[1], [0], [0], [1], [0, 0, 1, 1], [], []>} : vector<32x32xf32>, vector<32x32xf32>, vector<32x32xf32> -> vector<32x32xf32>
    %160 = arith.addf %153, %159 : vector<32x32xf32>
    %c8_161 = arith.constant 8 : index
    %c0_162 = arith.constant 0 : index
    %c0_163 = arith.constant 0 : index
    %161 = vector.load %arg10[%c8_161, %c0_162, %c0_163] : memref<9x32x32xf32, #tpu.memory_space<vmem>>, vector<1x32x32xf32>
    %162 = vector.shape_cast %161 : vector<1x32x32xf32> to vector<32x32xf32>
    %cst_164 = arith.constant dense<0.000000e+00> : vector<32x32xf32>
    %163 = tpu.matmul %105, %162, %cst_164 {dimension_numbers = #tpu.dot_dimension_numbers<[1], [0], [0], [1], [0, 0, 1, 1], [], []>} : vector<32x32xf32>, vector<32x32xf32>, vector<32x32xf32> -> vector<32x32xf32>
    %c8_165 = arith.constant 8 : index
    %c0_166 = arith.constant 0 : index
    %c0_167 = arith.constant 0 : index
    %164 = vector.load %arg13[%c8_165, %c0_166, %c0_167] : memref<9x32x32xf32, #tpu.memory_space<vmem>>, vector<1x32x32xf32>
    %165 = vector.shape_cast %164 : vector<1x32x32xf32> to vector<32x32xf32>
    %cst_168 = arith.constant dense<0.000000e+00> : vector<32x32xf32>
    %166 = tpu.matmul %165, %163, %cst_168 {dimension_numbers = #tpu.dot_dimension_numbers<[1], [0], [0], [1], [0, 0, 1, 1], [], []>} : vector<32x32xf32>, vector<32x32xf32>, vector<32x32xf32> -> vector<32x32xf32>
    %167 = arith.addf %160, %166 : vector<32x32xf32>
    %c0_169 = arith.constant 0 : index
    %c0_170 = arith.constant 0 : index
    %168 = vector.load %arg14[%c0_169, %c0_170] : memref<32x1xf32, #tpu.memory_space<vmem>>, vector<32x1xf32>
    %169 = vector.broadcast %168 : vector<32x1xf32> to vector<32x32xf32>
    %170 = arith.addf %167, %169 : vector<32x32xf32>
    %cst_171 = arith.constant 0.000000e+00 : f32
    %171 = vector.broadcast %cst_171 : f32 to vector<32x32xf32>
    %172 = arith.cmpf oge, %170, %171 : vector<32x32xf32>
    %cst_172 = arith.constant 2.000000e-01 : f32
    %173 = vector.broadcast %cst_172 : f32 to vector<32x32xf32>
    %174 = arith.mulf %173, %170 : vector<32x32xf32>
    %175 = arith.select %172, %170, %174 : vector<32x32xi1>, vector<32x32xf32>
    %cst_173 = arith.constant 1.41421354 : f32
    %176 = vector.broadcast %cst_173 : f32 to vector<32x32xf32>
    %177 = arith.mulf %175, %176 : vector<32x32xf32>
    %c0_174 = arith.constant 0 : index
    %c0_175 = arith.constant 0 : index
    %178 = vector.load %arg15[%c0_174, %c0_175] : memref<16x32xf32, #tpu.memory_space<vmem>>, vector<16x32xf32>
    %cst_176 = arith.constant dense<0.000000e+00> : vector<16x32xf32>
    %179 = tpu.matmul %178, %177, %cst_176 {dimension_numbers = #tpu.dot_dimension_numbers<[1], [0], [0], [1], [0, 0, 1, 1], [], []>} : vector<16x32xf32>, vector<32x32xf32>, vector<16x32xf32> -> vector<16x32xf32>
    %180 = arith.addf %93, %179 : vector<16x32xf32>
    %c0_177 = arith.constant 0 : index
    %c0_178 = arith.constant 0 : index
    %181 = vector.load %arg16[%c0_177, %c0_178] : memref<16x32xf32, #tpu.memory_space<vmem>>, vector<16x32xf32>
    %182 = arith.mulf %180, %181 : vector<16x32xf32>
    %c0_179 = arith.constant 0 : index
    %c0_180 = arith.constant 0 : index
    %183 = vector.load %arg17[%c0_179, %c0_180] : memref<32x2xf32, #tpu.memory_space<vmem>>, vector<32x2xf32>
    %cst_181 = arith.constant dense<0.000000e+00> : vector<16x2xf32>
    %184 = tpu.matmul %182, %183, %cst_181 {dimension_numbers = #tpu.dot_dimension_numbers<[1], [0], [0], [1], [0, 0, 1, 1], [], []>} : vector<16x32xf32>, vector<32x2xf32>, vector<16x2xf32> -> vector<16x2xf32>
    %c0_182 = arith.constant 0 : index
    %c0_183 = arith.constant 0 : index
    %185 = vector.load %arg18[%c0_182, %c0_183] : memref<1x16xf32, #tpu.memory_space<vmem>>, vector<1x16xf32>
    %cst_184 = arith.constant dense<0.000000e+00> : vector<1x2xf32>
    %186 = tpu.matmul %185, %184, %cst_184 {dimension_numbers = #tpu.dot_dimension_numbers<[1], [0], [0], [1], [0, 0, 1, 1], [], []>} : vector<1x16xf32>, vector<16x2xf32>, vector<1x2xf32> -> vector<1x2xf32>
    %c0_185 = arith.constant 0 : index
    %c0_186 = arith.constant 0 : index
    %187 = vector.load %arg19[%c0_185, %c0_186] : memref<1x2xf32, #tpu.memory_space<vmem>>, vector<1x2xf32>
    tpu.vector_store %arg19[%c0_185, %c0_186], %186 {strides = array<i32>} : memref<1x2xf32, #tpu.memory_space<vmem>>, vector<1x2xf32>,
    return
  }
}

</mosaic_0001>

<bundles_post_ra>
// kernel: tile.7
= control target key start
LH: loop header
LB: loop body
LE: loop exit
PB: predicated region body
PF: predicated region fallthrough
CT: control target
= control target key end

     0   :  { %vm82_vm0 = vcmask 1047556   ;;  %vm84_vm1 = vcmask 130048   ;;  %vm103_vm2 = vcmask 261248   ;;  %s225_s0 = inlined_call_operand.vmem [shape: f32[16,2,16], index: 0, kind: input, shape index: {}]   ;;  %s226_s1 = inlined_call_operand.vmem [shape: f32[16,32], index: 1, kind: output, shape index: {}]  }
   0x1   :  { %v138_v0 = vld [vmem:[%s225_s0 + $0xe] sm:$0x3]  ;;  %v139_v1 = vld [vmem:[%s225_s0 + $0xc] sm:$0x3]  ;;  %v140_v2 = vld [vmem:[%s225_s0 + $0xa] sm:$0x3] }
   0x2   :  { %48 = vst [vmem:[#allocation0 + $0x38] sm:$0x3] %v138_v0  ;;  %53 = vst [vmem:[#allocation0 + $0x30] sm:$0x3] %v139_v1  ;;  %v141_v3 = vld [vmem:[%s225_s0 + $0x8] sm:$0x3] }
   0x3   :  { %58 = vst [vmem:[#allocation0 + $0x28] sm:$0x3] %v140_v2  ;;  %v142_v4 = vld [vmem:[%s225_s0 + $0x6] sm:$0x3]  ;;  %v143_v5 = vld [vmem:[%s225_s0 + $0x4] sm:$0x3] }
   0x4   :  { %63 = vst [vmem:[#allocation0 + $0x20] sm:$0x3] %v141_v3  ;;  %68 = vst [vmem:[#allocation0 + $0x18] sm:$0x3] %v142_v4  ;;  %v144_v6 = vld [vmem:[%s225_s0 + $0x2] sm:$0x3] }
   0x5   :  { %73 = vst [vmem:[#allocation0 + $0x10] sm:$0x3] %v143_v5  ;;  %v78_v7 = vld [vmem:[%s225_s0] sm:$0x3]  ;;  %77 = vst [vmem:[#allocation0 + $0x8] sm:$0x3] %v144_v6 }
   0x6   :  { %79 = vst [vmem:[#allocation0] sm:$0x3] %v78_v7  ;;  %v130_v8 = vld [vmem:[%s225_s0 + $0x1e] sm:$0x3]  ;;  %v131_v9 = vld [vmem:[%s225_s0 + $0x1c] sm:$0x3] }
   0x7   :  { %v132_v10 = vld [vmem:[%s225_s0 + $0x1a] sm:$0x3]  ;;  %8 = vst [vmem:[#allocation0 + $0x78] sm:$0x3] %v130_v8  ;;  %13 = vst [vmem:[#allocation0 + $0x70] sm:$0x3] %v131_v9 }
   0x8   :  { %18 = vst [vmem:[#allocation0 + $0x68] sm:$0x3] %v132_v10  ;;  %v133_v11 = vld [vmem:[%s225_s0 + $0x18] sm:$0x3]  ;;  %v134_v12 = vld [vmem:[%s225_s0 + $0x16] sm:$0x3] }
   0x9   :  { %v135_v13 = vld [vmem:[%s225_s0 + $0x14] sm:$0x3]  ;;  %23 = vst [vmem:[#allocation0 + $0x60] sm:$0x3] %v133_v11  ;;  %28 = vst [vmem:[#allocation0 + $0x58] sm:$0x3] %v134_v12 }
   0xa   :  { %33 = vst [vmem:[#allocation0 + $0x50] sm:$0x3] %v135_v13  ;;  %v136_v14 = vld [vmem:[%s225_s0 + $0x12] sm:$0x3]  ;;  %v137_v15 = vld [vmem:[%s225_s0 + $0x10] sm:$0x3] }
   0xb   :  { %38 = vst [vmem:[#allocation0 + $0x48] sm:$0x3] %v136_v14  ;;  %43 = vst [vmem:[#allocation0 + $0x40] sm:$0x3] %v137_v15  ;;  %s148_s0 = smov 16  }
   0xc   :  { %v98_v16 = vld [vmem:[#allocation0 + $0x1] ss:$8 sm:$0xf0]   ;;  %v81_v17 = vld [vmem:[#allocation0] ss:$8 sm:$0xf0]  }
   0xd   :  { %v96_v18 = vld [vmem:[#allocation0 + $0x1] ss:$8 sm:$0xf]   ;;  %v80_v19 = vld [vmem:[#allocation0] ss:$8 sm:$0xf]  }
   0xe   :  { %v100_v20 = vsel %vm82_vm0, %v98_v16, %v96_v18  ;;  %v83_v21 = vsel %vm82_vm0, %v81_v17, %v80_v19 }
   0xf   :  { %101 = vrot.lane.b32.xlu0 %v100_v20, %s148_s0  ;;  %85 = vst.msk [vmem:[%s226_s1] sm:$0xff] %vm84_vm1, %v83_v21  }
  0x10   :  { %v108_v22 = vld [vmem:[#allocation0 + $0x41] ss:$8 sm:$0xf0]   ;;  %v89_v23 = vld [vmem:[#allocation0 + $0x40] ss:$8 sm:$0xf0]  }
  0x12   :  { %v106_v24 = vld [vmem:[#allocation0 + $0x41] ss:$8 sm:$0xf]   ;;  %v87_v25 = vld [vmem:[#allocation0 + $0x40] ss:$8 sm:$0xf]  }
  0x13   :  { %v110_v26 = vsel %vm82_vm0, %v108_v22, %v106_v24  ;;  %v91_v27 = vsel %vm82_vm0, %v89_v23, %v87_v25 }
  0x14   :  { %145 = vst.msk [vmem:[%s226_s1 + $0x8] sm:$0xff] %vm84_vm1, %v91_v27   ;;  %111 = vrot.lane.b32.xlu0 %v110_v26, %s148_s0 }
  0x81   :  { %v102_v28 = vpop.permute.xlu0 %101  }
  0x82   :  { %104 = vst.msk [vmem:[%s226_s1] sm:$0xff] %vm103_vm2, %v102_v28  }
  0x86   :  { %v112_v29 = vpop.permute.xlu0 %111  }
  0x87   :  { %146 = vst.msk [vmem:[%s226_s1 + $0x8] sm:$0xff] %vm103_vm2, %v112_v29  }

// kernel: discriminator_forward.1
= control target key start
LH: loop header
LB: loop body
LE: loop exit
PB: predicated region body
PF: predicated region fallthrough
CT: control target
= control target key end

     0   :  { %s7429_s0 = inlined_call_operand.vmem [shape: f32[3,128], index: 0, kind: input, shape index: {}]   ;;  %s7430_s1 = inlined_call_operand.hbm [shape: f32[8,3], index: 1, kind: input, shape index: {}]   ;;  %s7431_s2 = inlined_call_operand.hbm [shape: f32[9,128,128], index: 2, kind: input, shape index: {}]   ;;  %s7432_s3 = inlined_call_operand.hbm [shape: f32[16,8], index: 3, kind: input, shape index: {}]   ;;  %s7433_s4 = inlined_call_operand.hbm [shape: f32[16,1], index: 4, kind: input, shape index: {}]   ;;  %s7434_s5 = inlined_call_operand.hbm [shape: f32[9,16,16], index: 5, kind: input, shape index: {}]   ;;  %s7435_s6 = inlined_call_operand.hbm [shape: f32[16,1], index: 6, kind: input, shape index: {}]   ;;  %s7436_s7 = inlined_call_operand.hbm [shape: f32[8,16], index: 7, kind: input, shape index: {}]   ;;  %s7437_s8 = inlined_call_operand.hbm [shape: f32[128,32], index: 8, kind: input, shape index: {}]   ;;  %s7438_s9 = inlined_call_operand.hbm [shape: f32[16,8], index: 9, kind: input, shape index: {}]   ;;  %s7439_s10 = inlined_call_operand.hbm [shape: f32[9,32,32], index: 10, kind: input, shape index: {}]   ;;  %s7440_s11 = inlined_call_operand.hbm [shape: f32[32,16], index: 11, kind: input, shape index: {}]   ;;  %s7441_s12 = inlined_call_operand.hbm [shape: f32[32,1], index: 12, kind: input, shape index: {}]   ;;  %s7442_s13 = inlined_call_operand.vmem [shape: f32[9,32,32], index: 13, kind: input, shape index: {}]   ;;  %s7443_s14 = inlined_call_operand.hbm [shape: f32[32,1], index: 14, kind: input, shape index: {}]   ;;  %s7444_s15 = inlined_call_operand.vmem [shape: f32[16,32], index: 15, kind: input, shape index: {}]   ;;  %s7445_s16 = inlined_call_operand.vmem [shape: f32[16,32], index: 16, kind: input, shape index: {}]   ;;  %s7446_s17 = inlined_call_operand.hbm [shape: f32[32,2], index: 17, kind: input, shape index: {}]   ;;  %s7447_s18 = inlined_call_operand.hbm [shape: f32[1,16], index: 18, kind: input, shape index: {}]   ;;  %s7448_s19 = inlined_call_operand.hbm [shape: f32[1,2], index: 19, kind: output, shape index: {}]  }
   0x1   :  { %7454 = sst [smem:[#allocation36_spill]] %s7429_s0 }
   0x2   :  { %7455 = sst [smem:[#allocation37_spill]] %s7430_s1 }
   0x3   :  { %7456 = sst [smem:[#allocation38_spill]] %s7431_s2 }
   0x4   :  { %7457 = sst [smem:[#allocation39_spill]] %s7432_s3 }
   0x5   :  { %7458 = sst [smem:[#allocation40_spill]] %s7445_s16 }
   0x6   :  { %7459 = sst [smem:[#allocation41_spill]] %s7448_s19 }
   0x7   :  { %24 = vsyncpa [#allocation3], 0 }
   0x8   :  { %25 = vsyncpa [#allocation6], 0 }
   0x9   :  { %26 = vsyncpa [#allocation9], 0 }
   0xa   :  { %27 = vsyncpa [#allocation12], 0 }
   0xb   :  { %28 = vsyncpa [#allocation15], 0 }
   0xc   :  { %29 = vsyncpa [#allocation18], 0 }
   0xd   :  { %30 = vsyncpa [#allocation21], 0 }
   0xe   :  { %31 = vsyncpa [#allocation24], 0 }
   0xf   :  { %32 = vsyncpa [#allocation4], 0  ;;  %s6746_s0 = smov [#allocation5]   ;;  %s7460_s1 = sld [smem:[#allocation38_spill]] }
  0x10   :  { %s50_s30 = sshll.u32 %s6746_s0, 4  ;;  %s51_s30 = int_to_ptr.vmem [resolvable:$true] %s50_s30 }
  0x15   :  { %s6376_s22 = scalar_lea.hbm %s7460_s1, 18432 }
  0x16   :  { %p6377_p0 = scmp.ne.s32.totalorder %s7460_s1, %s6376_s22  ;;  %p6380_p1 = scmp.lt.u32.totalorder %s6376_s22, %s7460_s1 }
  0x18   :  { %p6382_p2 = pnand %p6380_p1, %p6377_p0 }
  0x1a   :  { %6385 = shalt.err (!%p6382_p2)
}
  0x1b   :  { %s6386_s3 = scalar_lea.vmem %s51_s30, 18432  ;;  %p6391_p4 = scmp.lt.s32.totalorder %s51_s30, %s51_s30 }
  0x1c   :  { %p6387_p3 = scmp.ne.s32.totalorder %s51_s30, %s6386_s3  ;;  %p6392_p5 = scmp.lt.s32.totalorder %s6386_s3, %s6386_s3 }
  0x1e   :  { %p6393_p6 = por %p6392_p5, %p6391_p4 }
  0x20   :  { %p6394_p7 = pnand %p6393_p6, %p6387_p3 }
  0x22   :  { %6397 = shalt.err (!%p6394_p7)
}
  0x23   :  { %s6747_s26 = smov 128   ;;  %s6748_s27 = smov 8  }
  0x24   :  { %56 = dma.hbm_to_vmem [thread:$0]  %s7460_s1, 18432, %s51_s30, [#allocation6], %s6747_s26, %s6747_s26, %s6748_s27  }
  0x25   :  { %s6749_s0 = smov [#allocation8]   ;;  %s6750_s21 = smov [#allocation11]  }
  0x26   :  { %s74_s20 = sshll.u32 %s6749_s0, 4  ;;  %s98_s22 = sshll.u32 %s6750_s21, 4  ;;  %s75_s20 = int_to_ptr.vmem [resolvable:$true] %s74_s20  ;;  %s99_s22 = int_to_ptr.vmem [resolvable:$true] %s98_s22 }
  0x27   :  { %s6398_s24 = scalar_lea.hbm %s7433_s4, 256 }
  0x28   :  { %p6399_p8 = scmp.ne.s32.totalorder %s7433_s4, %s6398_s24  ;;  %p6402_p9 = scmp.lt.u32.totalorder %s6398_s24, %s7433_s4 }
  0x2a   :  { %p6404_p10 = pnand %p6402_p9, %p6399_p8 }
  0x2c   :  { %6407 = shalt.err (!%p6404_p10)
}
  0x2d   :  { %s6408_s30 = scalar_lea.vmem %s75_s20, 256  ;;  %p6413_p12 = scmp.lt.s32.totalorder %s75_s20, %s75_s20 }
  0x2e   :  { %p6409_p11 = scmp.ne.s32.totalorder %s75_s20, %s6408_s30  ;;  %p6414_p13 = scmp.lt.s32.totalorder %s6408_s30, %s6408_s30 }
  0x30   :  { %p6415_p0 = por %p6414_p13, %p6413_p12 }
  0x32   :  { %p6416_p1 = pnand %p6415_p0, %p6409_p11 }
  0x34   :  { %6419 = shalt.err (!%p6416_p1)
}
  0x35   :  { %80 = dma.hbm_to_vmem [thread:$0]  %s7433_s4, 256, %s75_s20, [#allocation9], %s6747_s26, %s6747_s26, %s6748_s27  }
  0x36   :  { %s6420_s19 = scalar_lea.hbm %s7435_s6, 256 }
  0x37   :  { %p6421_p2 = scmp.ne.s32.totalorder %s7435_s6, %s6420_s19  ;;  %p6424_p3 = scmp.lt.u32.totalorder %s6420_s19, %s7435_s6 }
  0x39   :  { %p6426_p4 = pnand %p6424_p3, %p6421_p2 }
  0x3b   :  { %6429 = shalt.err (!%p6426_p4)
}
  0x3c   :  { %s6430_s24 = scalar_lea.vmem %s99_s22, 256  ;;  %p6435_p6 = scmp.lt.s32.totalorder %s99_s22, %s99_s22 }
  0x3d   :  { %p6431_p5 = scmp.ne.s32.totalorder %s99_s22, %s6430_s24  ;;  %p6436_p7 = scmp.lt.s32.totalorder %s6430_s24, %s6430_s24 }
  0x3f   :  { %p6437_p8 = por %p6436_p7, %p6435_p6 }
  0x41   :  { %p6438_p9 = pnand %p6437_p8, %p6431_p5 }
  0x43   :  { %6441 = shalt.err (!%p6438_p9)
}
  0x44   :  { %104 = dma.hbm_to_vmem [thread:$0]  %s7435_s6, 256, %s99_s22, [#allocation12], %s6747_s26, %s6747_s26, %s6748_s27  }
  0x45   :  { %s6751_s25 = smov [#allocation14]   ;;  %s6752_s30 = smov [#allocation17]  }
  0x46   :  { %s120_s3 = sshll.u32 %s6751_s25, 4  ;;  %s144_s1 = sshll.u32 %s6752_s30, 4  ;;  %s121_s3 = int_to_ptr.vmem [resolvable:$true] %s120_s3  ;;  %s145_s1 = int_to_ptr.vmem [resolvable:$true] %s144_s1 }
  0x47   :  { %s6442_s16 = scalar_lea.hbm %s7437_s8, 2048 }
  0x48   :  { %p6443_p10 = scmp.ne.s32.totalorder %s7437_s8, %s6442_s16  ;;  %p6446_p11 = scmp.lt.u32.totalorder %s6442_s16, %s7437_s8 }
  0x4a   :  { %p6448_p12 = pnand %p6446_p11, %p6443_p10 }
  0x4c   :  { %6451 = shalt.err (!%p6448_p12)
}
  0x4d   :  { %s6452_s6 = scalar_lea.vmem %s121_s3, 2048  ;;  %p6457_p0 = scmp.lt.s32.totalorder %s121_s3, %s121_s3 }
  0x4e   :  { %p6453_p13 = scmp.ne.s32.totalorder %s121_s3, %s6452_s6  ;;  %p6458_p1 = scmp.lt.s32.totalorder %s6452_s6, %s6452_s6 }
  0x50   :  { %p6459_p2 = por %p6458_p1, %p6457_p0 }
  0x52   :  { %p6460_p3 = pnand %p6459_p2, %p6453_p13 }
  0x54   :  { %6463 = shalt.err (!%p6460_p3)
}
  0x55   :  { %126 = dma.hbm_to_vmem [thread:$0]  %s7437_s8, 2048, %s121_s3, [#allocation15], %s6747_s26, %s6747_s26, %s6748_s27  }
  0x56   :  { %s6464_s20 = scalar_lea.hbm %s7439_s10, 4608 }
  0x57   :  { %p6465_p4 = scmp.ne.s32.totalorder %s7439_s10, %s6464_s20  ;;  %p6468_p5 = scmp.lt.u32.totalorder %s6464_s20, %s7439_s10 }
  0x59   :  { %p6470_p6 = pnand %p6468_p5, %p6465_p4 }
  0x5b   :  { %6473 = shalt.err (!%p6470_p6)
}
  0x5c   :  { %s6474_s16 = scalar_lea.vmem %s145_s1, 4608  ;;  %p6479_p8 = scmp.lt.s32.totalorder %s145_s1, %s145_s1 }
  0x5d   :  { %p6475_p7 = scmp.ne.s32.totalorder %s145_s1, %s6474_s16  ;;  %p6480_p9 = scmp.lt.s32.totalorder %s6474_s16, %s6474_s16 }
  0x5f   :  { %p6481_p10 = por %p6480_p9, %p6479_p8 }
  0x61   :  { %p6482_p11 = pnand %p6481_p10, %p6475_p7 }
  0x63   :  { %6485 = shalt.err (!%p6482_p11)
}
  0x64   :  { %150 = dma.hbm_to_vmem [thread:$0]  %s7439_s10, 4608, %s145_s1, [#allocation18], %s6747_s26, %s6747_s26, %s6748_s27  }
  0x65   :  { %s6753_s19 = smov [#allocation20]   ;;  %s6754_s21 = smov [#allocation23]  }
  0x66   :  { %s168_s0 = sshll.u32 %s6753_s19, 4  ;;  %s198_s2 = sshll.u32 %s6754_s21, 4  ;;  %s169_s0 = int_to_ptr.vmem [resolvable:$true] %s168_s0  ;;  %s199_s2 = int_to_ptr.vmem [resolvable:$true] %s198_s2 }
  0x67   :  { %s6486_s23 = scalar_lea.hbm %s7441_s12, 512 }
  0x68   :  { %p6487_p12 = scmp.ne.s32.totalorder %s7441_s12, %s6486_s23  ;;  %p6490_p13 = scmp.lt.u32.totalorder %s6486_s23, %s7441_s12 }
  0x6a   :  { %p6492_p0 = pnand %p6490_p13, %p6487_p12 }
  0x6c   :  { %6495 = shalt.err (!%p6492_p0)
}
  0x6d   :  { %s6496_s10 = scalar_lea.vmem %s169_s0, 512  ;;  %p6501_p2 = scmp.lt.s32.totalorder %s169_s0, %s169_s0 }
  0x6e   :  { %p6497_p1 = scmp.ne.s32.totalorder %s169_s0, %s6496_s10  ;;  %p6502_p3 = scmp.lt.s32.totalorder %s6496_s10, %s6496_s10 }
  0x70   :  { %p6503_p4 = por %p6502_p3, %p6501_p2 }
  0x72   :  { %p6504_p5 = pnand %p6503_p4, %p6497_p1 }
  0x74   :  { %6507 = shalt.err (!%p6504_p5)
}
  0x75   :  { %174 = dma.hbm_to_vmem [thread:$0]  %s7441_s12, 512, %s169_s0, [#allocation21], %s6747_s26, %s6747_s26, %s6748_s27  }
  0x76   :  { %s6508_s16 = scalar_lea.hbm %s7446_s17, 512 }
  0x77   :  { %p6509_p6 = scmp.ne.s32.totalorder %s7446_s17, %s6508_s16  ;;  %p6512_p7 = scmp.lt.u32.totalorder %s6508_s16, %s7446_s17 }
  0x79   :  { %p6514_p8 = pnand %p6512_p7, %p6509_p6 }
  0x7b   :  { %6517 = shalt.err (!%p6514_p8)
}
  0x7c   :  { %s6518_s6 = scalar_lea.vmem %s199_s2, 512  ;;  %p6523_p10 = scmp.lt.s32.totalorder %s199_s2, %s199_s2 }
  0x7d   :  { %p6519_p9 = scmp.ne.s32.totalorder %s199_s2, %s6518_s6  ;;  %p6524_p11 = scmp.lt.s32.totalorder %s6518_s6, %s6518_s6 }
  0x7f   :  { %p6525_p12 = por %p6524_p11, %p6523_p10 }
  0x81   :  { %p6526_p13 = pnand %p6525_p12, %p6519_p9 }
  0x83   :  { %6529 = shalt.err (!%p6526_p13)
}
  0x84   :  { %204 = dma.hbm_to_vmem [thread:$0]  %s7446_s17, 512, %s199_s2, [#allocation24], %s6747_s26, %s6747_s26, %s6748_s27  }
  0x85   :  { %s6755_s22 = smov [#allocation2]   ;;  %s6756_s24 = smov [#allocation7]  }
  0x86   :  { %s41_s23 = sshll.u32 %s6755_s22, 4  ;;  %s62_s4 = sshll.u32 %s6756_s24, 4  ;;  %s42_s23 = int_to_ptr.vmem [resolvable:$true] %s41_s23  ;;  %s63_s4 = int_to_ptr.vmem [resolvable:$true] %s62_s4 }
  0x87   :  { %s7461_s10 = sld [smem:[#allocation37_spill]] }
  0x8d   :  { %s6530_s1 = scalar_lea.hbm %s7461_s10, 128 }
  0x8e   :  { %p6531_p0 = scmp.ne.s32.totalorder %s7461_s10, %s6530_s1  ;;  %p6534_p1 = scmp.lt.u32.totalorder %s6530_s1, %s7461_s10 }
  0x90   :  { %p6536_p2 = pnand %p6534_p1, %p6531_p0 }
  0x92   :  { %6539 = shalt.err (!%p6536_p2)
}
  0x93   :  { %s6540_s17 = scalar_lea.vmem %s42_s23, 128  ;;  %p6545_p4 = scmp.lt.s32.totalorder %s42_s23, %s42_s23 }
  0x94   :  { %p6541_p3 = scmp.ne.s32.totalorder %s42_s23, %s6540_s17  ;;  %p6546_p5 = scmp.lt.s32.totalorder %s6540_s17, %s6540_s17 }
  0x96   :  { %p6547_p6 = por %p6546_p5, %p6545_p4 }
  0x98   :  { %p6548_p7 = pnand %p6547_p6, %p6541_p3 }
  0x9a   :  { %6551 = shalt.err (!%p6548_p7)
}
  0x9b   :  { %44 = dma.hbm_to_vmem [thread:$0]  %s7461_s10, 128, %s42_s23, [#allocation3]  }
  0x9c   :  { %s7462_s21 = sld [smem:[#allocation39_spill]] }
  0xa2   :  { %s6552_s6 = scalar_lea.hbm %s7462_s21, 256 }
  0xa3   :  { %p6553_p8 = scmp.ne.s32.totalorder %s7462_s21, %s6552_s6  ;;  %p6556_p9 = scmp.lt.u32.totalorder %s6552_s6, %s7462_s21 }
  0xa5   :  { %p6558_p10 = pnand %p6556_p9, %p6553_p8 }
  0xa7   :  { %6561 = shalt.err (!%p6558_p10)
}
  0xa8   :  { %s6562_s20 = scalar_lea.vmem %s63_s4, 256  ;;  %p6567_p12 = scmp.lt.s32.totalorder %s63_s4, %s63_s4 }
  0xa9   :  { %p6563_p11 = scmp.ne.s32.totalorder %s63_s4, %s6562_s20  ;;  %p6568_p13 = scmp.lt.s32.totalorder %s6562_s20, %s6562_s20 }
  0xab   :  { %p6569_p0 = por %p6568_p13, %p6567_p12 }
  0xad   :  { %p6570_p1 = pnand %p6569_p0, %p6563_p11 }
  0xaf   :  { %6573 = shalt.err (!%p6570_p1)
}
  0xb0   :  { %68 = dma.hbm_to_vmem [thread:$0]  %s7462_s21, 256, %s63_s4, [#allocation6], %s6747_s26, %s6747_s26, %s6748_s27  }
  0xb1   :  { %s6757_s10 = smov [#allocation10]   ;;  %s6758_s30 = smov [#allocation13]  }
  0xb2   :  { %s86_s1 = sshll.u32 %s6757_s10, 4  ;;  %s111_s28 = sshll.u32 %s6758_s30, 4  ;;  %s87_s1 = int_to_ptr.vmem [resolvable:$true] %s86_s1  ;;  %s112_s28 = int_to_ptr.vmem [resolvable:$true] %s111_s28 }
  0xb3   :  { %s6574_s17 = scalar_lea.hbm %s7434_s5, 2304 }
  0xb4   :  { %p6575_p2 = scmp.ne.s32.totalorder %s7434_s5, %s6574_s17  ;;  %p6578_p3 = scmp.lt.u32.totalorder %s6574_s17, %s7434_s5 }
  0xb6   :  { %p6580_p4 = pnand %p6578_p3, %p6575_p2 }
  0xb8   :  { %6583 = shalt.err (!%p6580_p4)
}
  0xb9   :  { %s6584_s4 = scalar_lea.vmem %s87_s1, 2304  ;;  %p6589_p6 = scmp.lt.s32.totalorder %s87_s1, %s87_s1 }
  0xba   :  { %p6585_p5 = scmp.ne.s32.totalorder %s87_s1, %s6584_s4  ;;  %p6590_p7 = scmp.lt.s32.totalorder %s6584_s4, %s6584_s4 }
  0xbc   :  { %p6591_p8 = por %p6590_p7, %p6589_p6 }
  0xbe   :  { %p6592_p9 = pnand %p6591_p8, %p6585_p5 }
  0xc0   :  { %6595 = shalt.err (!%p6592_p9)
}
  0xc1   :  { %92 = dma.hbm_to_vmem [thread:$0]  %s7434_s5, 2304, %s87_s1, [#allocation9], %s6747_s26, %s6747_s26, %s6748_s27  }
  0xc2   :  { %s6596_s22 = scalar_lea.hbm %s7436_s7, 128 }
  0xc3   :  { %p6597_p10 = scmp.ne.s32.totalorder %s7436_s7, %s6596_s22  ;;  %p6600_p11 = scmp.lt.u32.totalorder %s6596_s22, %s7436_s7 }
  0xc5   :  { %p6602_p12 = pnand %p6600_p11, %p6597_p10 }
  0xc7   :  { %6605 = shalt.err (!%p6602_p12)
}
  0xc8   :  { %s6606_s10 = scalar_lea.vmem %s112_s28, 128  ;;  %p6611_p0 = scmp.lt.s32.totalorder %s112_s28, %s112_s28 }
  0xc9   :  { %p6607_p13 = scmp.ne.s32.totalorder %s112_s28, %s6606_s10  ;;  %p6612_p1 = scmp.lt.s32.totalorder %s6606_s10, %s6606_s10 }
  0xcb   :  { %p6613_p2 = por %p6612_p1, %p6611_p0 }
  0xcd   :  { %p6614_p3 = pnand %p6613_p2, %p6607_p13 }
  0xcf   :  { %6617 = shalt.err (!%p6614_p3)
}
  0xd0   :  { %114 = dma.hbm_to_vmem [thread:$0]  %s7436_s7, 128, %s112_s28, [#allocation12]  }
  0xd1   :  { %s6759_s30 = smov [#allocation16]   ;;  %s6760_s16 = smov [#allocation19]  }
  0xd2   :  { %s132_s29 = sshll.u32 %s6759_s30, 4  ;;  %s156_s17 = sshll.u32 %s6760_s16, 4  ;;  %s133_s29 = int_to_ptr.vmem [resolvable:$true] %s132_s29  ;;  %s157_s17 = int_to_ptr.vmem [resolvable:$true] %s156_s17 }
  0xd3   :  { %s6618_s3 = scalar_lea.hbm %s7438_s9, 256 }
  0xd4   :  { %p6619_p4 = scmp.ne.s32.totalorder %s7438_s9, %s6618_s3  ;;  %p6622_p5 = scmp.lt.u32.totalorder %s6618_s3, %s7438_s9 }
  0xd6   :  { %p6624_p6 = pnand %p6622_p5, %p6619_p4 }
  0xd8   :  { %6627 = shalt.err (!%p6624_p6)
}
  0xd9   :  { %s6628_s7 = scalar_lea.vmem %s133_s29, 256  ;;  %p6633_p8 = scmp.lt.s32.totalorder %s133_s29, %s133_s29 }
  0xda   :  { %p6629_p7 = scmp.ne.s32.totalorder %s133_s29, %s6628_s7  ;;  %p6634_p9 = scmp.lt.s32.totalorder %s6628_s7, %s6628_s7 }
  0xdc   :  { %p6635_p10 = por %p6634_p9, %p6633_p8 }
  0xde   :  { %p6636_p11 = pnand %p6635_p10, %p6629_p7 }
  0xe0   :  { %6639 = shalt.err (!%p6636_p11)
}
  0xe1   :  { %138 = dma.hbm_to_vmem [thread:$0]  %s7438_s9, 256, %s133_s29, [#allocation15], %s6747_s26, %s6747_s26, %s6748_s27  }
  0xe2   :  { %s6640_s24 = scalar_lea.hbm %s7440_s11, 512 }
  0xe3   :  { %p6641_p12 = scmp.ne.s32.totalorder %s7440_s11, %s6640_s24  ;;  %p6644_p13 = scmp.lt.u32.totalorder %s6640_s24, %s7440_s11 }
  0xe5   :  { %p6646_p0 = pnand %p6644_p13, %p6641_p12 }
  0xe7   :  { %6649 = shalt.err (!%p6646_p0)
}
  0xe8   :  { %s6650_s5 = scalar_lea.vmem %s157_s17, 512  ;;  %p6655_p2 = scmp.lt.s32.totalorder %s157_s17, %s157_s17 }
  0xe9   :  { %p6651_p1 = scmp.ne.s32.totalorder %s157_s17, %s6650_s5  ;;  %p6656_p3 = scmp.lt.s32.totalorder %s6650_s5, %s6650_s5 }
  0xeb   :  { %p6657_p4 = por %p6656_p3, %p6655_p2 }
  0xed   :  { %p6658_p5 = pnand %p6657_p4, %p6651_p1 }
  0xef   :  { %6661 = shalt.err (!%p6658_p5)
}
  0xf0   :  { %162 = dma.hbm_to_vmem [thread:$0]  %s7440_s11, 512, %s157_s17, [#allocation18], %s6747_s26, %s6747_s26, %s6748_s27  }
  0xf1   :  { %s6761_s30 = smov [#allocation22]   ;;  %s6762_s16 = smov [#allocation25]  }
  0xf2   :  { %s182_s29 = sshll.u32 %s6761_s30, 4  ;;  %s211_s2 = sshll.u32 %s6762_s16, 4  ;;  %s183_s29 = int_to_ptr.vmem [resolvable:$true] %s182_s29  ;;  %s212_s2 = int_to_ptr.vmem [resolvable:$true] %s211_s2 }
  0xf3   :  { %s6662_s19 = scalar_lea.hbm %s7443_s14, 512 }
  0xf4   :  { %p6663_p6 = scmp.ne.s32.totalorder %s7443_s14, %s6662_s19  ;;  %p6666_p7 = scmp.lt.u32.totalorder %s6662_s19, %s7443_s14 }
  0xf6   :  { %p6668_p8 = pnand %p6666_p7, %p6663_p6 }
  0xf8   :  { %6671 = shalt.err (!%p6668_p8)
}
  0xf9   :  { %s6672_s11 = scalar_lea.vmem %s183_s29, 512  ;;  %p6677_p10 = scmp.lt.s32.totalorder %s183_s29, %s183_s29 }
  0xfa   :  { %p6673_p9 = scmp.ne.s32.totalorder %s183_s29, %s6672_s11  ;;  %p6678_p11 = scmp.lt.s32.totalorder %s6672_s11, %s6672_s11 }
  0xfc   :  { %p6679_p12 = por %p6678_p11, %p6677_p10 }
  0xfe   :  { %p6680_p13 = pnand %p6679_p12, %p6673_p9 }
 0x100   :  { %6683 = shalt.err (!%p6680_p13)
}
 0x101   :  { %188 = dma.hbm_to_vmem [thread:$0]  %s7443_s14, 512, %s183_s29, [#allocation21], %s6747_s26, %s6747_s26, %s6748_s27  }
 0x102   :  { %s6684_s22 = scalar_lea.hbm %s7447_s18, 16 }
 0x103   :  { %p6685_p0 = scmp.ne.s32.totalorder %s7447_s18, %s6684_s22  ;;  %p6688_p1 = scmp.lt.u32.totalorder %s6684_s22, %s7447_s18 }
 0x105   :  { %p6690_p2 = pnand %p6688_p1, %p6685_p0 }
 0x107   :  { %6693 = shalt.err (!%p6690_p2)
}
 0x108   :  { %s6694_s10 = scalar_lea.vmem %s212_s2, 16  ;;  %s6698_s5 = scalar_lea.vmem %s212_s2, 32 }
 0x109   :  { %p6695_p3 = scmp.ne.s32.totalorder %s212_s2, %s6694_s10  ;;  %p6699_p4 = scmp.lt.s32.totalorder %s212_s2, %s212_s2 }
 0x10a   :  { %p6700_p5 = scmp.lt.s32.totalorder %s6698_s5, %s6694_s10 }
 0x10c   :  { %p6701_p6 = por %p6700_p5, %p6699_p4 }
 0x10e   :  { %p6702_p7 = pnand %p6701_p6, %p6695_p3 }
 0x110   :  { %6705 = shalt.err (!%p6702_p7)
}
 0x111   :  { %214 = dma.hbm_to_vmem [thread:$0]  %s7447_s18, 16, %s212_s2, [#allocation24]  }
 0x112   :  { %6728 = dma.done.wait [#allocation3], 128  }
 0x113   :  { %6729 = vsyncadd [#allocation3], 4294967168 }
 0x114   :  { %6730 = dma.done.wait [#allocation6], 18688  }
 0x115   :  { %6731 = vsyncadd [#allocation6], 4294948608 }
 0x116   :  { %6732 = dma.done.wait [#allocation9], 2560  }
 0x117   :  { %6733 = vsyncadd [#allocation9], 4294964736 }
 0x118   :  { %6734 = dma.done.wait [#allocation12], 384  }
 0x119   :  { %6735 = vsyncadd [#allocation12], 4294966912 }
 0x11a   :  { %6736 = dma.done.wait [#allocation15], 2304  }
 0x11b   :  { %6737 = vsyncadd [#allocation15], 4294964992 }
 0x11c   :  { %6738 = dma.done.wait [#allocation18], 5120  }
 0x11d   :  { %6739 = vsyncadd [#allocation18], 4294962176 }
 0x11e   :  { %6740 = dma.done.wait [#allocation21], 1024  }
 0x11f   :  { %6741 = vsyncadd [#allocation21], 4294966272 }
 0x120   :  { %6742 = dma.done.wait [#allocation24], 528  }
 0x121   :  { %6743 = vsyncadd [#allocation24], 4294966768  ;;  %v6763_v0 = vmov 0.0   ;;  %vm6764_vm0 = vmmov 0   ;;  %vm266_vm1 = vcmask 1042432   ;;  %vm262_vm2 = vcmask 23552  }
 0x122   :  { %5060 = vmatprep.subr.mxu0 %v6763_v0  ;;  %5062 = vmatprep.mubr.msk.f32.mxu0 %vm6764_vm0, %v6763_v0  ;;  %s7463_s9 = sld [smem:[#allocation36_spill]]  ;;  %v261_v2 = vld [vmem:[#allocation2] sm:$0xff]  ;;  %v340_v3 = vld [vmem:[#allocation7] sm:$0xff]  ;;  %vm354_vm3 = vcmask 64512   ;;  %v342_v4 = vld [vmem:[#allocation8] sm:$0xff]  ;;  %v6765_v5 = vmov 0  }
 0x123   :  { %5067 = vmatprep.mubr.msk.f32.mxu1 %vm354_vm3, %v340_v3  ;;  %6374 = vset.pattern.permute.xlu0 %v6765_v5  ;;  %v444_v6 = vld [vmem:[#allocation5] sm:$0xff]  ;;  %v343_v7 = vld [vmem:[#allocation8 + $0x8] sm:$0xff]  ;;  %v445_v8 = vld [vmem:[#allocation5 + $0x8] sm:$0xff]  ;;  %vm632_vm6 = vcmask 130048   ;;  %vm2452_vm11 = vcmask 261120   ;;  %s7464_s20 = sld [smem:[#allocation40_spill]] }
 0x124   :  { %6375 = vset.pattern.permute.xlu1 %v6765_v5  ;;  %346 = vperm.xlu0 %6374, %v342_v4   ;;  %v5786_v9 = vpack.c.bf16 %v445_v8, %v444_v6  ;;  %v446_v10 = vld [vmem:[#allocation5 + $0x10] sm:$0xff]  ;;  %v447_v11 = vld [vmem:[#allocation5 + $0x18] sm:$0xff]  ;;  %v448_v14 = vld [vmem:[#allocation5 + $0x20] sm:$0xff] }
 0x125   :  { %v5790_v12 = vpack.c.bf16 %v447_v11, %v446_v10  ;;  %v2311_v13 = vld [vmem:[#allocation20] sm:$0xff]  ;;  %v449_v15 = vld [vmem:[#allocation5 + $0x28] sm:$0xff]  ;;  %v450_v18 = vld [vmem:[#allocation5 + $0x30] sm:$0xff] }
 0x126   :  { %v5794_v16 = vpack.c.bf16 %v449_v15, %v448_v14  ;;  %v2313_v17 = vld [vmem:[#allocation20 + $0x10] sm:$0xff]  ;;  %v451_v19 = vld [vmem:[#allocation5 + $0x38] sm:$0xff]  ;;  %v452_v22 = vld [vmem:[#allocation5 + $0x40] sm:$0xff] }
 0x127   :  { %v5798_v20 = vpack.c.bf16 %v451_v19, %v450_v18  ;;  %v4215_v21 = vld [vmem:[#allocation22] sm:$0xff]  ;;  %v453_v23 = vld [vmem:[#allocation5 + $0x48] sm:$0xff]  ;;  %v454_v26 = vld [vmem:[#allocation5 + $0x50] sm:$0xff] }
 0x128   :  { %v260_v1 = vld [vmem:[%s7463_s9] sm:$0x7]  ;;  %351 = vperm.xlu0 %6374, %v343_v7   ;;  %v5802_v24 = vpack.c.bf16 %v453_v23, %v452_v22  ;;  %v4217_v25 = vld [vmem:[#allocation22 + $0x10] sm:$0xff]  ;;  %v538_v29 = vld [vmem:[#allocation5 + $0x80] sm:$0xff] }
 0x129   :  { %5061 = vmatpush3.msk.msra.mxu0 %vm266_vm1, %v260_v1  ;;  %v455_v27 = vld [vmem:[#allocation5 + $0x58] sm:$0xff]  ;;  %v539_v30 = vld [vmem:[#allocation5 + $0x88] sm:$0xff]  ;;  %v540_v31 = vld [vmem:[#allocation5 + $0x90] sm:$0xff] }
 0x12a   :  { %5063 = vmatmul.mubr.msk.f32.vlgmr.msra.gmra.mrb[0].mxu0 %vm262_vm2, %v261_v2  ;;  %5787 = vmatprep.subr.bf16.mxu0 %v5786_v9  ;;  %v5806_v28 = vpack.c.bf16 %v455_v27, %v454_v26  ;;  %v541_v32 = vld [vmem:[#allocation5 + $0x98] sm:$0xff]  ;;  %v5818_v33 = vpack.c.bf16 %v539_v30, %v538_v29  ;;  %v341_v35 = vld [vmem:[#allocation7 + $0x8] sm:$0xff]  ;;  %v542_v38 = vld [vmem:[#allocation5 + $0xa0] sm:$0xff]  ;;  %vm4507_vm2 = vcmask 8192  }
 0x12b   :  { %5789 = vmatpush3.bf16.msra.mxu0 %v5786_v9  ;;  %v5822_v37 = vpack.c.bf16 %v541_v32, %v540_v31  ;;  %v543_v39 = vld [vmem:[#allocation5 + $0xa8] sm:$0xff]  ;;  %v544_v41 = vld [vmem:[#allocation5 + $0xb0] sm:$0xff]  ;;  %v545_v42 = vld [vmem:[#allocation5 + $0xb8] sm:$0xff] }
 0x12c   :  { %5791 = vmatprep.subr.bf16.mxu0 %v5790_v12  ;;  %2317 = vperm.xlu0 %6374, %v2311_v13   ;;  %v5826_v40 = vpack.c.bf16 %v543_v39, %v542_v38  ;;  %v5830_v43 = vpack.c.bf16 %v545_v42, %v544_v41  ;;  %v546_v44 = vld [vmem:[#allocation5 + $0xc0] sm:$0xff]  ;;  %v547_v45 = vld [vmem:[#allocation5 + $0xc8] sm:$0xff]  ;;  %v548_v47 = vld [vmem:[#allocation5 + $0xd0] sm:$0xff] }
 0x12d   :  { %v5834_v46 = vpack.c.bf16 %v547_v45, %v546_v44  ;;  %v549_v48 = vld [vmem:[#allocation5 + $0xd8] sm:$0xff]  ;;  %v550_v50 = vld [vmem:[#allocation5 + $0xe0] sm:$0xff]  ;;  %v551_v51 = vld [vmem:[#allocation5 + $0xe8] sm:$0xff] }
 0x12e   :  { %v5838_v49 = vpack.c.bf16 %v549_v48, %v548_v47  ;;  %v5842_v52 = vpack.c.bf16 %v551_v51, %v550_v50  ;;  %v456_v53 = vld [vmem:[#allocation5 + $0x60] sm:$0xff]  ;;  %v457_v54 = vld [vmem:[#allocation5 + $0x68] sm:$0xff]  ;;  %v552_v56 = vld [vmem:[#allocation5 + $0xf0] sm:$0xff] }
 0x12f   :  { %5793 = vmatpush3.bf16.msra.mxu0 %v5790_v12  ;;  %v5810_v55 = vpack.c.bf16 %v457_v54, %v456_v53  ;;  %v553_v57 = vld [vmem:[#allocation5 + $0xf8] sm:$0xff]  ;;  %v458_v59 = vld [vmem:[#allocation5 + $0x70] sm:$0xff]  ;;  %v796_v62 = vld [vmem:[#allocation5 + $0x100] sm:$0xff] }
 0x130   :  { %5795 = vmatprep.subr.bf16.mxu0 %v5794_v16  ;;  %2327 = vperm.xlu0 %6374, %v2313_v17   ;;  %v5846_v58 = vpack.c.bf16 %v553_v57, %v552_v56  ;;  %v459_v60 = vld [vmem:[#allocation5 + $0x78] sm:$0xff]  ;;  %v797_v63 = vld [vmem:[#allocation5 + $0x108] sm:$0xff]  ;;  %v798_v11 = vld [vmem:[#allocation5 + $0x110] sm:$0xff] }
 0x131   :  { %v5814_v61 = vpack.c.bf16 %v459_v60, %v458_v59  ;;  %v5858_v1 = vpack.c.bf16 %v797_v63, %v796_v62  ;;  %v799_v12 = vld [vmem:[#allocation5 + $0x118] sm:$0xff]  ;;  %v800_v17 = vld [vmem:[#allocation5 + $0x120] sm:$0xff]  ;;  %v801_v18 = vld [vmem:[#allocation5 + $0x128] sm:$0xff] }
 0x132   :  { %v5866_v19 = vpack.c.bf16 %v801_v18, %v800_v17  ;;  %v804_v23 = vld [vmem:[#allocation5 + $0x140] sm:$0xff]  ;;  %v806_v26 = vld [vmem:[#allocation5 + $0x150] sm:$0xff]  ;;  %v807_v27 = vld [vmem:[#allocation5 + $0x158] sm:$0xff] }
 0x133   :  { %5797 = vmatpush3.bf16.msra.mxu0 %v5794_v16  ;;  %v5862_v16 = vpack.c.bf16 %v799_v12, %v798_v11  ;;  %v808_v29 = vld [vmem:[#allocation5 + $0x160] sm:$0xff]  ;;  %v809_v30 = vld [vmem:[#allocation5 + $0x168] sm:$0xff]  ;;  %v810_v32 = vld [vmem:[#allocation5 + $0x170] sm:$0xff] }
 0x134   :  { %5799 = vmatprep.subr.bf16.mxu0 %v5798_v20  ;;  %4221 = vperm.xlu0 %6374, %v4215_v21   ;;  %v803_v21 = vld [vmem:[#allocation5 + $0x138] sm:$0xff]  ;;  %v5882_v31 = vpack.c.bf16 %v809_v30, %v808_v29  ;;  %v1154_v39 = vld [vmem:[#allocation5 + $0x210] sm:$0xff]  ;;  %v1156_v42 = vld [vmem:[#allocation5 + $0x220] sm:$0xff] }
 0x135   :  { %v1158_v45 = vld [vmem:[#allocation5 + $0x230] sm:$0xff]  ;;  %v1160_v48 = vld [vmem:[#allocation5 + $0x240] sm:$0xff]  ;;  %v1521_v18 = vld [vmem:[#allocation5 + $0x368] sm:$0xff] }
 0x136   :  { %v1162_v51 = vld [vmem:[#allocation5 + $0x250] sm:$0xff]  ;;  %v1164_v54 = vld [vmem:[#allocation5 + $0x260] sm:$0xff] }
 0x137   :  { %5801 = vmatpush3.bf16.msra.mxu0 %v5798_v20  ;;  %v802_v20 = vld [vmem:[#allocation5 + $0x130] sm:$0xff]  ;;  %v1508_v60 = vld [vmem:[#allocation5 + $0x300] sm:$0xff] }
 0x138   :  { %5803 = vmatprep.subr.bf16.mxu0 %v5802_v24  ;;  %4231 = vperm.xlu0 %6374, %v4217_v25   ;;  %v5870_v22 = vpack.c.bf16 %v803_v21, %v802_v20  ;;  %v1166_v57 = vld [vmem:[#allocation5 + $0x270] sm:$0xff]  ;;  %v1520_v17 = vld [vmem:[#allocation5 + $0x360] sm:$0xff]  ;;  %v1523_v21 = vld [vmem:[#allocation5 + $0x378] sm:$0xff] }
 0x139   :  { %v1510_v63 = vld [vmem:[#allocation5 + $0x310] sm:$0xff]  ;;  %v1868_v30 = vld [vmem:[#allocation5 + $0x420] sm:$0xff] }
 0x13a   :  { %v1518_v12 = vld [vmem:[#allocation5 + $0x350] sm:$0xff] }
 0x13b   :  { %5805 = vmatpush3.bf16.msra.mxu0 %v5802_v24  ;;  %v805_v24 = vld [vmem:[#allocation5 + $0x148] sm:$0xff]  ;;  %v1522_v20 = vld [vmem:[#allocation5 + $0x370] sm:$0xff] }
 0x13c   :  { %5807 = vmatprep.subr.bf16.mxu0 %v5806_v28  ;;  %v5874_v25 = vpack.c.bf16 %v805_v24, %v804_v23  ;;  %v1864_v23 = vld [vmem:[#allocation5 + $0x400] sm:$0xff]  ;;  %v1865_v24 = vld [vmem:[#allocation5 + $0x408] sm:$0xff] }
 0x13f   :  { %5809 = vmatpush3.bf16.msra.mxu0 %v5806_v28  ;;  %v5878_v28 = vpack.c.bf16 %v807_v27, %v806_v26  ;;  %v6074_v26 = vpack.c.bf16 %v1865_v24, %v1864_v23  ;;  %v1866_v27 = vld [vmem:[#allocation5 + $0x410] sm:$0xff]  ;;  %v989_v24 = vld [vmem:[#allocation5 + $0x1f8] sm:$0xff] }
 0x140   :  { %5811 = vmatprep.subr.bf16.mxu0 %v5810_v55  ;;  %v988_v23 = vld [vmem:[#allocation5 + $0x1f0] sm:$0xff] }
 0x143   :  { %5813 = vmatpush3.bf16.msra.mxu0 %v5810_v55  ;;  %v1165_v55 = vld [vmem:[#allocation5 + $0x268] sm:$0xff] }
 0x144   :  { %5815 = vmatprep.subr.bf16.mxu0 %v5814_v61  ;;  %v5954_v56 = vpack.c.bf16 %v1165_v55, %v1164_v54  ;;  %v631_v55 = vld [vmem:[#allocation10 + $0x18] sm:$0xff] }
 0x147   :  { %5817 = vmatpush3.bf16.msra.mxu0 %v5814_v61  ;;  %v1509_v61 = vld [vmem:[#allocation5 + $0x308] sm:$0xff] }
 0x148   :  { %v6002_v62 = vpack.c.bf16 %v1509_v61, %v1508_v60  ;;  %v975_v60 = vld [vmem:[#allocation5 + $0x188] sm:$0xff] }
 0x1a3   :  { %v347_v2 = vpop.permute.xlu0 %346 }
 0x1a7   :  { %v352_v3 = vpop.permute.xlu0 %351 }
 0x1fd   :  { %v7091_v34 = vpop.f32.mrb[0].mxu0 }
 0x1fe   :  { %v5064_v36 = vpop.f32.mrb[1].mxu0  ;;  %5065 = vmatprep.subr.mxu1 %v7091_v34 }
 0x1ff   :  { %5066 = vmatpush3.msra.mxu1 %v7091_v34  ;;  %v1152_v36 = vld [vmem:[#allocation5 + $0x200] sm:$0xff] }
 0x200   :  { %5068 = vmatmul.mubr.msk.f32.vlgmr.msra.gmra.mrb[0].mxu1 %vm354_vm3, %v341_v35  ;;  %5819 = vmatprep.subr.bf16.mxu1 %v5818_v33 }
 0x201   :  { %5821 = vmatpush3.bf16.msra.mxu1 %v5818_v33  ;;  %v811_v33 = vld [vmem:[#allocation5 + $0x178] sm:$0xff] }
 0x202   :  { %5823 = vmatprep.subr.bf16.mxu1 %v5822_v37  ;;  %v5886_v35 = vpack.c.bf16 %v811_v33, %v810_v32  ;;  %v1870_v33 = vld [vmem:[#allocation5 + $0x430] sm:$0xff] }
 0x205   :  { %5825 = vmatpush3.bf16.msra.mxu1 %v5822_v37  ;;  %v1153_v37 = vld [vmem:[#allocation5 + $0x208] sm:$0xff] }
 0x206   :  { %5827 = vmatprep.subr.bf16.mxu1 %v5826_v40  ;;  %v5930_v38 = vpack.c.bf16 %v1153_v37, %v1152_v36  ;;  %v1872_v37 = vld [vmem:[#allocation5 + $0x440] sm:$0xff] }
 0x209   :  { %5829 = vmatpush3.bf16.msra.mxu1 %v5826_v40  ;;  %v1155_v40 = vld [vmem:[#allocation5 + $0x218] sm:$0xff] }
 0x20a   :  { %5831 = vmatprep.subr.bf16.mxu1 %v5830_v43  ;;  %v5934_v41 = vpack.c.bf16 %v1155_v40, %v1154_v39  ;;  %v1874_v40 = vld [vmem:[#allocation5 + $0x450] sm:$0xff] }
 0x20d   :  { %5833 = vmatpush3.bf16.msra.mxu1 %v5830_v43  ;;  %v1157_v43 = vld [vmem:[#allocation5 + $0x228] sm:$0xff] }
 0x20e   :  { %5835 = vmatprep.subr.bf16.mxu1 %v5834_v46  ;;  %v5938_v44 = vpack.c.bf16 %v1157_v43, %v1156_v42  ;;  %v1876_v43 = vld [vmem:[#allocation5 + $0x460] sm:$0xff] }
 0x211   :  { %5837 = vmatpush3.bf16.msra.mxu1 %v5834_v46  ;;  %v1159_v46 = vld [vmem:[#allocation5 + $0x238] sm:$0xff] }
 0x212   :  { %5839 = vmatprep.subr.bf16.mxu1 %v5838_v49  ;;  %v5942_v47 = vpack.c.bf16 %v1159_v46, %v1158_v45  ;;  %v1878_v46 = vld [vmem:[#allocation5 + $0x470] sm:$0xff] }
 0x215   :  { %5841 = vmatpush3.bf16.msra.mxu1 %v5838_v49  ;;  %v1161_v49 = vld [vmem:[#allocation5 + $0x248] sm:$0xff] }
 0x216   :  { %5843 = vmatprep.subr.bf16.mxu1 %v5842_v52  ;;  %v5946_v50 = vpack.c.bf16 %v1161_v49, %v1160_v48 }
 0x219   :  { %5845 = vmatpush3.bf16.msra.mxu1 %v5842_v52  ;;  %v1163_v52 = vld [vmem:[#allocation5 + $0x258] sm:$0xff] }
 0x21a   :  { %5847 = vmatprep.subr.bf16.mxu1 %v5846_v58  ;;  %v5950_v53 = vpack.c.bf16 %v1163_v52, %v1162_v51 }
 0x21d   :  { %5849 = vmatpush3.bf16.msra.mxu1 %v5846_v58  ;;  %v1167_v58 = vld [vmem:[#allocation5 + $0x278] sm:$0xff] }
 0x21e   :  { %5859 = vmatprep.subr.bf16.mxu1 %v5858_v1  ;;  %v5958_v59 = vpack.c.bf16 %v1167_v58, %v1166_v57  ;;  %v536_v57 = vld [vmem:[#allocation10 + $0x8] sm:$0xff]  ;;  %v888_v58 = vld [vmem:[#allocation10 + $0x20] sm:$0xff] }
 0x2d3   :  { %v5069_v4 = vpop.f32.mrb[0].mxu1 }
 0x2d4   :  { %v433_v5 = vadd.f32 %v5069_v4, %v352_v3  ;;  %v427_v6 = vpop.f32.mrb[1].mxu1  ;;  %v1512_v3 = vld [vmem:[#allocation5 + $0x320] sm:$0xff]  ;;  %v1513_v4 = vld [vmem:[#allocation5 + $0x328] sm:$0xff] }
 0x2d5   :  { %v428_v7 = vadd.f32 %v427_v6, %v347_v2  ;;  %v1514_v6 = vld [vmem:[#allocation5 + $0x330] sm:$0xff] }
 0x2d6   :  { %vm437_vm4 = vcmp.ge.f32.partialorder %v433_v5, 0.0  ;;  %v439_v8 = vmul.f32 0.2, %v433_v5 }
 0x2d7   :  { %vm436_vm5 = vcmp.ge.f32.partialorder %v428_v7, 0.0  ;;  %v438_v9 = vmul.f32 0.2, %v428_v7 }
 0x2d8   :  { %v441_v10 = vsel %vm437_vm4, %v433_v5, %v439_v8  ;;  %v6010_v5 = vpack.c.bf16 %v1513_v4, %v1512_v3  ;;  %v977_v3 = vld [vmem:[#allocation5 + $0x198] sm:$0xff]  ;;  %v889_v4 = vld [vmem:[#allocation10 + $0x28] sm:$0xff] }
 0x2d9   :  { %v440_v13 = vsel %vm436_vm5, %v428_v7, %v438_v9  ;;  %v7098_v15 = vmul.f32 1.4142135, %v441_v10  ;;  %v1515_v7 = vld [vmem:[#allocation5 + $0x338] sm:$0xff]  ;;  %v1516_v9 = vld [vmem:[#allocation5 + $0x340] sm:$0xff]  ;;  %v1517_v10 = vld [vmem:[#allocation5 + $0x348] sm:$0xff] }
 0x2da   :  { %v7096_v14 = vmul.f32 1.4142135, %v440_v13  ;;  %v6014_v8 = vpack.c.bf16 %v1515_v7, %v1514_v6  ;;  %v6018_v11 = vpack.c.bf16 %v1517_v10, %v1516_v9  ;;  %v1519_v13 = vld [vmem:[#allocation5 + $0x358] sm:$0xff]  ;;  %v978_v6 = vld [vmem:[#allocation5 + $0x1a0] sm:$0xff]  ;;  %v979_v7 = vld [vmem:[#allocation5 + $0x1a8] sm:$0xff] }
 0x2db   :  { %v980_v9 = vld [vmem:[#allocation5 + $0x1b0] sm:$0xff]  ;;  %v981_v10 = vld [vmem:[#allocation5 + $0x1b8] sm:$0xff] }
 0x2dc   :  { %5102 = vmatprep.mubr.f32.mxu0 %v7096_v14  ;;  %5137 = vmatprep.mubr.f32.mxu1 %v7096_v14 }
 0x2dd   :  { %5103 = vmatmul.mubr.f32.vlgmr.msra.gmra.mrb[2].mxu0 %v7098_v15  ;;  %5138 = vmatmul.mubr.f32.vlgmr.msra.gmra.mrb[2].mxu1 %v7098_v15 }
 0x2de   :  { %5861 = vmatpush3.bf16.msra.mxu1 %v5858_v1  ;;  %5186 = vmatprep.mubr.f32.mxu1 %v7096_v14  ;;  %v1511_v1 = vld [vmem:[#allocation5 + $0x318] sm:$0xff] }
 0x2df   :  { %5863 = vmatprep.subr.bf16.mxu1 %v5862_v16  ;;  %v6006_v2 = vpack.c.bf16 %v1511_v1, %v1510_v63 }
 0x2e2   :  { %5865 = vmatpush3.bf16.msra.mxu1 %v5862_v16  ;;  %v6022_v16 = vpack.c.bf16 %v1519_v13, %v1518_v12  ;;  %v982_v12 = vld [vmem:[#allocation5 + $0x1c0] sm:$0xff]  ;;  %v983_v13 = vld [vmem:[#allocation5 + $0x1c8] sm:$0xff] }
 0x2e3   :  { %5867 = vmatprep.subr.bf16.mxu1 %v5866_v19 }
 0x2e6   :  { %5869 = vmatpush3.bf16.msra.mxu1 %v5866_v19  ;;  %v6026_v19 = vpack.c.bf16 %v1521_v18, %v1520_v17  ;;  %v984_v17 = vld [vmem:[#allocation5 + $0x1d0] sm:$0xff]  ;;  %v985_v18 = vld [vmem:[#allocation5 + $0x1d8] sm:$0xff] }
 0x2e7   :  { %5871 = vmatprep.subr.bf16.mxu1 %v5870_v22 }
 0x2ea   :  { %5873 = vmatpush3.bf16.msra.mxu1 %v5870_v22  ;;  %v6030_v22 = vpack.c.bf16 %v1523_v21, %v1522_v20  ;;  %v986_v20 = vld [vmem:[#allocation5 + $0x1e0] sm:$0xff]  ;;  %v987_v21 = vld [vmem:[#allocation5 + $0x1e8] sm:$0xff] }
 0x2eb   :  { %5875 = vmatprep.subr.bf16.mxu1 %v5874_v25 }
 0x2ee   :  { %5877 = vmatpush3.bf16.msra.mxu1 %v5874_v25  ;;  %v630_v25 = vld [vmem:[#allocation10 + $0x10] sm:$0xff] }
 0x2ef   :  { %5879 = vmatprep.subr.bf16.mxu1 %v5878_v28  ;;  %5144 = vmatprep.mubr.msk.f32.mxu0 %vm632_vm6, %v630_v25  ;;  %v5922_v25 = vpack.c.bf16 %v989_v24, %v988_v23  ;;  %v1693_v23 = vld [vmem:[#allocation5 + $0x3b8] sm:$0xff] }
 0x2f2   :  { %5881 = vmatpush3.bf16.msra.mxu1 %v5878_v28  ;;  %v1867_v28 = vld [vmem:[#allocation5 + $0x418] sm:$0xff] }
 0x2f3   :  { %5883 = vmatprep.subr.bf16.mxu1 %v5882_v31  ;;  %v6078_v29 = vpack.c.bf16 %v1867_v28, %v1866_v27 }
 0x2f6   :  { %5885 = vmatpush3.bf16.msra.mxu1 %v5882_v31  ;;  %v1869_v31 = vld [vmem:[#allocation5 + $0x428] sm:$0xff] }
 0x2f7   :  { %5887 = vmatprep.subr.bf16.mxu1 %v5886_v35  ;;  %v6082_v32 = vpack.c.bf16 %v1869_v31, %v1868_v30 }
 0x2fa   :  { %5889 = vmatpush3.bf16.msra.mxu1 %v5886_v35  ;;  %v1871_v35 = vld [vmem:[#allocation5 + $0x438] sm:$0xff] }
 0x2fb   :  { %5931 = vmatprep.subr.bf16.mxu1 %v5930_v38  ;;  %v6086_v36 = vpack.c.bf16 %v1871_v35, %v1870_v33 }
 0x2fd   :  { %5187 = vmatmul.mubr.f32.vlgmr.msra.gmra.mrb[4].mxu1 %v7098_v15 }
 0x2fe   :  { %5933 = vmatpush3.bf16.msra.mxu1 %v5930_v38  ;;  %5270 = vmatprep.mubr.f32.mxu1 %v7096_v14  ;;  %v1873_v38 = vld [vmem:[#allocation5 + $0x448] sm:$0xff] }
 0x2ff   :  { %5935 = vmatprep.subr.bf16.mxu1 %v5934_v41  ;;  %v6090_v39 = vpack.c.bf16 %v1873_v38, %v1872_v37 }
 0x302   :  { %5937 = vmatpush3.bf16.msra.mxu1 %v5934_v41  ;;  %v1875_v41 = vld [vmem:[#allocation5 + $0x458] sm:$0xff] }
 0x303   :  { %5939 = vmatprep.subr.bf16.mxu1 %v5938_v44  ;;  %v6094_v42 = vpack.c.bf16 %v1875_v41, %v1874_v40  ;;  %v1330_v40 = vld [vmem:[#allocation5 + $0x280] sm:$0xff]  ;;  %v1331_v41 = vld [vmem:[#allocation5 + $0x288] sm:$0xff] }
 0x306   :  { %5941 = vmatpush3.bf16.msra.mxu1 %v5938_v44  ;;  %v1877_v44 = vld [vmem:[#allocation5 + $0x468] sm:$0xff] }
 0x307   :  { %5943 = vmatprep.subr.bf16.mxu1 %v5942_v47  ;;  %v6098_v45 = vpack.c.bf16 %v1877_v44, %v1876_v43  ;;  %v1244_v43 = vld [vmem:[#allocation10 + $0x40] sm:$0xff]  ;;  %v5966_v44 = vpack.c.bf16 %v1331_v41, %v1330_v40  ;;  %v2042_v40 = vld [vmem:[#allocation11 + $0x8] sm:$0xff] }
 0x308   :  { %v2312_v41 = vld [vmem:[#allocation20 + $0x8] sm:$0xff] }
 0x30a   :  { %5945 = vmatpush3.bf16.msra.mxu1 %v5942_v47  ;;  %v1879_v47 = vld [vmem:[#allocation5 + $0x478] sm:$0xff] }
 0x30b   :  { %5947 = vmatprep.subr.bf16.mxu1 %v5946_v50  ;;  %v6102_v48 = vpack.c.bf16 %v1879_v47, %v1878_v46  ;;  %v1333_v46 = vld [vmem:[#allocation5 + $0x298] sm:$0xff]  ;;  %v1245_v47 = vld [vmem:[#allocation10 + $0x48] sm:$0xff] }
 0x30e   :  { %5949 = vmatpush3.bf16.msra.mxu1 %v5946_v50 }
 0x30f   :  { %5951 = vmatprep.subr.bf16.mxu1 %v5950_v53 }
 0x312   :  { %5953 = vmatpush3.bf16.msra.mxu1 %v5950_v53 }
 0x313   :  { %5955 = vmatprep.subr.bf16.mxu1 %v5954_v56 }
 0x316   :  { %5957 = vmatpush3.bf16.msra.mxu1 %v5954_v56  ;;  %v535_v56 = vld [vmem:[#allocation10] sm:$0xff] }
 0x317   :  { %5959 = vmatprep.subr.bf16.mxu1 %v5958_v59 }
 0x31a   :  { %5961 = vmatpush3.bf16.msra.mxu1 %v5958_v59  ;;  %v974_v59 = vld [vmem:[#allocation5 + $0x180] sm:$0xff] }
 0x31b   :  { %6003 = vmatprep.subr.bf16.mxu1 %v6002_v62  ;;  %v5894_v1 = vpack.c.bf16 %v975_v60, %v974_v59  ;;  %v1341_v59 = vld [vmem:[#allocation5 + $0x2d8] sm:$0xff] }
 0x31d   :  { %5271 = vmatmul.mubr.f32.vlgmr.msra.gmra.mrb[6].mxu1 %v7098_v15 }
 0x31e   :  { %6005 = vmatpush3.bf16.msra.mxu1 %v6002_v62  ;;  %5354 = vmatprep.mubr.f32.mxu1 %v7096_v14 }
 0x31f   :  { %6007 = vmatprep.subr.bf16.mxu1 %v6006_v2 }
 0x322   :  { %6009 = vmatpush3.bf16.msra.mxu1 %v6006_v2  ;;  %v976_v2 = vld [vmem:[#allocation5 + $0x190] sm:$0xff] }
 0x323   :  { %6011 = vmatprep.subr.bf16.mxu1 %v6010_v5 }
 0x326   :  { %6013 = vmatpush3.bf16.msra.mxu1 %v6010_v5  ;;  %v5898_v5 = vpack.c.bf16 %v977_v3, %v976_v2  ;;  %v1345_v2 = vld [vmem:[#allocation5 + $0x2f8] sm:$0xff] }
 0x327   :  { %6015 = vmatprep.subr.bf16.mxu1 %v6014_v8 }
 0x32a   :  { %6017 = vmatpush3.bf16.msra.mxu1 %v6014_v8  ;;  %v5902_v8 = vpack.c.bf16 %v979_v7, %v978_v6 }
 0x32b   :  { %6019 = vmatprep.subr.bf16.mxu1 %v6018_v11 }
 0x32e   :  { %6021 = vmatpush3.bf16.msra.mxu1 %v6018_v11  ;;  %v5906_v11 = vpack.c.bf16 %v981_v10, %v980_v9  ;;  %v1687_v9 = vld [vmem:[#allocation5 + $0x388] sm:$0xff]  ;;  %v1423_v10 = vld [vmem:[#allocation10 + $0x58] sm:$0xff] }
 0x32f   :  { %6023 = vmatprep.subr.bf16.mxu1 %v6022_v16 }
 0x332   :  { %6025 = vmatpush3.bf16.msra.mxu1 %v6022_v16  ;;  %v5910_v16 = vpack.c.bf16 %v983_v13, %v982_v12  ;;  %v1688_v13 = vld [vmem:[#allocation5 + $0x390] sm:$0xff] }
 0x333   :  { %6027 = vmatprep.subr.bf16.mxu1 %v6026_v19 }
 0x336   :  { %6029 = vmatpush3.bf16.msra.mxu1 %v6026_v19  ;;  %v5914_v19 = vpack.c.bf16 %v985_v18, %v984_v17  ;;  %v1601_v17 = vld [vmem:[#allocation10 + $0x68] sm:$0xff] }
 0x337   :  { %6031 = vmatprep.subr.bf16.mxu1 %v6030_v22 }
 0x33a   :  { %6033 = vmatpush3.bf16.msra.mxu1 %v6030_v22  ;;  %v5918_v22 = vpack.c.bf16 %v987_v21, %v986_v20  ;;  %v1691_v20 = vld [vmem:[#allocation5 + $0x3a8] sm:$0xff] }
 0x33b   :  { %6075 = vmatprep.subr.bf16.mxu1 %v6074_v26 }
 0x33d   :  { %5355 = vmatmul.mubr.f32.vlgmr.msra.gmra.mrb[8].mxu1 %v7098_v15 }
 0x33e   :  { %6077 = vmatpush3.bf16.msra.mxu1 %v6074_v26  ;;  %5438 = vmatprep.mubr.f32.mxu1 %v7096_v14 }
 0x33f   :  { %6079 = vmatprep.subr.bf16.mxu1 %v6078_v29 }
 0x342   :  { %6081 = vmatpush3.bf16.msra.mxu1 %v6078_v29 }
 0x343   :  { %6083 = vmatprep.subr.bf16.mxu1 %v6082_v32 }
 0x346   :  { %6085 = vmatpush3.bf16.msra.mxu1 %v6082_v32 }
 0x347   :  { %6087 = vmatprep.subr.bf16.mxu1 %v6086_v36 }
 0x34a   :  { %6089 = vmatpush3.bf16.msra.mxu1 %v6086_v36  ;;  %v1066_v36 = vld [vmem:[#allocation10 + $0x30] sm:$0xff] }
 0x34b   :  { %6091 = vmatprep.subr.bf16.mxu1 %v6090_v39 }
 0x34e   :  { %6093 = vmatpush3.bf16.msra.mxu1 %v6090_v39 }
 0x34f   :  { %6095 = vmatprep.subr.bf16.mxu1 %v6094_v42 }
 0x352   :  { %6097 = vmatpush3.bf16.msra.mxu1 %v6094_v42  ;;  %v1067_v42 = vld [vmem:[#allocation10 + $0x38] sm:$0xff] }
 0x353   :  { %6099 = vmatprep.subr.bf16.mxu1 %v6098_v45 }
 0x356   :  { %6101 = vmatpush3.bf16.msra.mxu1 %v6098_v45  ;;  %v1332_v45 = vld [vmem:[#allocation5 + $0x290] sm:$0xff] }
 0x357   :  { %6103 = vmatprep.subr.bf16.mxu1 %v6102_v48 }
 0x35a   :  { %6105 = vmatpush3.bf16.msra.mxu1 %v6102_v48  ;;  %v5970_v48 = vpack.c.bf16 %v1333_v46, %v1332_v45 }
 0x35d   :  { %5439 = vmatmul.mubr.f32.vlgmr.msra.gmra.mrb[10].mxu1 %v7098_v15 }
 0x35e   :  { %5452 = vmatprep.mubr.msk.f32.mxu1 %vm6764_vm0, %v6763_v0 }
 0x3b0   :  { %v5104_v49 = vpop.f32.mrb[2].mxu0  ;;  %v5139_v50 = vpop.f32.mrb[2].mxu1 }
 0x3b1   :  { %v526_v51 = vpop.f32.mrb[3].mxu0  ;;  %v620_v52 = vpop.f32.mrb[3].mxu1 }
 0x3b2   :  { %v5854_v53 = vpack.c.bf16 %v5104_v49, %v526_v51  ;;  %v5850_v54 = vpack.c.bf16 %v5139_v50, %v620_v52  ;;  %v1334_v49 = vld [vmem:[#allocation5 + $0x2a0] sm:$0xff]  ;;  %v1335_v50 = vld [vmem:[#allocation5 + $0x2a8] sm:$0xff]  ;;  %v1336_v52 = vld [vmem:[#allocation5 + $0x2b0] sm:$0xff] }
 0x3b3   :  { %v5974_v51 = vpack.c.bf16 %v1335_v50, %v1334_v49  ;;  %v1957_v49 = vld [vmem:[#allocation10 + $0x88] sm:$0xff]  ;;  %v6766_v50 = vmov 0.0|0.0  }
 0x3b4   :  { %5851 = vmatprep.subr.bf16.mxu0 %v5850_v54  ;;  %6110 = vmatprep.subr.bf16.mxu1 %v6766_v50 }
 0x3b5   :  { %5853 = vmatpush3.bf16.msra.mxu0 %v5850_v54 }
 0x3b6   :  { %5855 = vmatprep.subr.bf16.mxu0 %v5854_v53 }
 0x3b8   :  { %5145 = vmatmul.mubr.msk.f32.vlgmr.msra.gmra.mrb[4].mxu0 %vm632_vm6, %v631_v55  ;;  %v1338_v55 = vld [vmem:[#allocation5 + $0x2c0] sm:$0xff] }
 0x3b9   :  { %5857 = vmatpush3.bf16.msra.mxu0 %v5854_v53  ;;  %5151 = vmatprep.mubr.msk.f32.mxu0 %vm632_vm6, %v535_v56  ;;  %v1337_v53 = vld [vmem:[#allocation5 + $0x2b8] sm:$0xff]  ;;  %v1339_v56 = vld [vmem:[#allocation5 + $0x2c8] sm:$0xff] }
 0x3ba   :  { %v5978_v54 = vpack.c.bf16 %v1337_v53, %v1336_v52  ;;  %v2139_v52 = vld [vmem:[#allocation14 + $0x8] sm:$0xff]  ;;  %v2140_v53 = vld [vmem:[#allocation14 + $0x10] sm:$0xff] }
 0x3c0   :  { %5152 = vmatmul.mubr.msk.f32.vlgmr.msra.gmra.mrb[4].mxu0 %vm632_vm6, %v536_v57  ;;  %v5982_v57 = vpack.c.bf16 %v1339_v56, %v1338_v55  ;;  %v2141_v55 = vld [vmem:[#allocation14 + $0x18] sm:$0xff]  ;;  %v2142_v56 = vld [vmem:[#allocation14 + $0x20] sm:$0xff] }
 0x3c1   :  { %5193 = vmatprep.mubr.msk.f32.mxu0 %vm632_vm6, %v888_v58  ;;  %v1340_v58 = vld [vmem:[#allocation5 + $0x2d0] sm:$0xff] }
 0x3c2   :  { %v5986_v60 = vpack.c.bf16 %v1341_v59, %v1340_v58  ;;  %v2144_v59 = vld [vmem:[#allocation14 + $0x30] sm:$0xff] }
 0x3d0   :  { %v5188_v61 = vpop.f32.mrb[4].mxu1 }
 0x3d1   :  { %v878_v62 = vpop.f32.mrb[5].mxu1 }
 0x3d2   :  { %v5890_v63 = vpack.c.bf16 %v5188_v61, %v878_v62  ;;  %v1342_v61 = vld [vmem:[#allocation5 + $0x2e0] sm:$0xff]  ;;  %v1343_v62 = vld [vmem:[#allocation5 + $0x2e8] sm:$0xff] }
 0x3d4   :  { %5891 = vmatprep.subr.bf16.mxu0 %v5890_v63 }
 0x3d5   :  { %5893 = vmatpush3.bf16.msra.mxu0 %v5890_v63  ;;  %v5990_v63 = vpack.c.bf16 %v1343_v62, %v1342_v61  ;;  %v2146_v62 = vld [vmem:[#allocation14 + $0x40] sm:$0xff] }
 0x3d6   :  { %5895 = vmatprep.subr.bf16.mxu0 %v5894_v1 }
 0x3d8   :  { %5194 = vmatmul.mubr.msk.f32.vlgmr.msra.gmra.mrb[4].mxu0 %vm632_vm6, %v889_v4  ;;  %v1422_v4 = vld [vmem:[#allocation10 + $0x50] sm:$0xff] }
 0x3d9   :  { %5897 = vmatpush3.bf16.msra.mxu0 %v5894_v1  ;;  %5228 = vmatprep.mubr.f32.mxu0 %v7096_v14  ;;  %v1344_v1 = vld [vmem:[#allocation5 + $0x2f0] sm:$0xff] }
 0x3da   :  { %5899 = vmatprep.subr.bf16.mxu0 %v5898_v5  ;;  %v5994_v3 = vpack.c.bf16 %v1345_v2, %v1344_v1  ;;  %v2148_v2 = vld [vmem:[#allocation14 + $0x50] sm:$0xff] }
 0x3dd   :  { %5901 = vmatpush3.bf16.msra.mxu0 %v5898_v5 }
 0x3de   :  { %5903 = vmatprep.subr.bf16.mxu0 %v5902_v8 }
 0x3e1   :  { %5905 = vmatpush3.bf16.msra.mxu0 %v5902_v8  ;;  %v1686_v8 = vld [vmem:[#allocation5 + $0x380] sm:$0xff] }
 0x3e2   :  { %5907 = vmatprep.subr.bf16.mxu0 %v5906_v11  ;;  %v6038_v12 = vpack.c.bf16 %v1687_v9, %v1686_v8 }
 0x3e5   :  { %5909 = vmatpush3.bf16.msra.mxu0 %v5906_v11  ;;  %v1600_v11 = vld [vmem:[#allocation10 + $0x60] sm:$0xff] }
 0x3e6   :  { %5911 = vmatprep.subr.bf16.mxu0 %v5910_v16 }
 0x3e9   :  { %5913 = vmatpush3.bf16.msra.mxu0 %v5910_v16  ;;  %v1689_v16 = vld [vmem:[#allocation5 + $0x398] sm:$0xff] }
 0x3ea   :  { %5915 = vmatprep.subr.bf16.mxu0 %v5914_v19  ;;  %v6042_v18 = vpack.c.bf16 %v1689_v16, %v1688_v13 }
 0x3ed   :  { %5917 = vmatpush3.bf16.msra.mxu0 %v5914_v19  ;;  %v1690_v19 = vld [vmem:[#allocation5 + $0x3a0] sm:$0xff] }
 0x3ee   :  { %5919 = vmatprep.subr.bf16.mxu0 %v5918_v22  ;;  %v6046_v21 = vpack.c.bf16 %v1691_v20, %v1690_v19 }
 0x3f0   :  { %v5272_v26 = vpop.f32.mrb[6].mxu1 }
 0x3f1   :  { %5921 = vmatpush3.bf16.msra.mxu0 %v5918_v22  ;;  %v1234_v27 = vpop.f32.mrb[7].mxu1  ;;  %v1692_v22 = vld [vmem:[#allocation5 + $0x3b0] sm:$0xff] }
 0x3f2   :  { %v5962_v28 = vpack.c.bf16 %v5272_v26, %v1234_v27  ;;  %5923 = vmatprep.subr.bf16.mxu0 %v5922_v25  ;;  %v6050_v24 = vpack.c.bf16 %v1693_v23, %v1692_v22  ;;  %v1695_v26 = vld [vmem:[#allocation5 + $0x3c8] sm:$0xff]  ;;  %v2063_v23 = vld [vmem:[#allocation13] sm:$0xff] }
 0x3f5   :  { %5925 = vmatpush3.bf16.msra.mxu0 %v5922_v25  ;;  %v1694_v25 = vld [vmem:[#allocation5 + $0x3c0] sm:$0xff] }
 0x3f6   :  { %v6054_v27 = vpack.c.bf16 %v1695_v26, %v1694_v25  ;;  %v2153_v25 = vld [vmem:[#allocation14 + $0x78] sm:$0xff] }
 0x3f8   :  { %5229 = vmatmul.mubr.f32.vlgmr.msra.gmra.mrb[6].mxu0 %v7098_v15 }
 0x3f9   :  { %5235 = vmatprep.mubr.msk.f32.mxu0 %vm632_vm6, %v1066_v36  ;;  %v1701_v36 = vld [vmem:[#allocation5 + $0x3f8] sm:$0xff] }
 0x410   :  { %v5356_v29 = vpop.f32.mrb[8].mxu1 }
 0x411   :  { %v1590_v30 = vpop.f32.mrb[9].mxu1 }
 0x412   :  { %v7122_v31 = vpack.c.bf16 %v5356_v29, %v1590_v30  ;;  %v1697_v29 = vld [vmem:[#allocation5 + $0x3d8] sm:$0xff] }
 0x430   :  { %v5440_v32 = vpop.f32.mrb[10].mxu1 }
 0x431   :  { %v1946_v33 = vpop.f32.mrb[11].mxu1 }
 0x432   :  { %v7124_v35 = vpack.c.bf16 %v5440_v32, %v1946_v33  ;;  %v1699_v32 = vld [vmem:[#allocation5 + $0x3e8] sm:$0xff]  ;;  %v1700_v33 = vld [vmem:[#allocation5 + $0x3f0] sm:$0xff] }
 0x4cb   :  { %v5230_v37 = vpop.f32.mrb[6].mxu0 }
 0x4cc   :  { %v1056_v38 = vpop.f32.mrb[7].mxu0 }
 0x4cd   :  { %v5926_v39 = vpack.c.bf16 %v5230_v37, %v1056_v38  ;;  %v6066_v37 = vpack.c.bf16 %v1701_v36, %v1700_v33  ;;  %v1778_v38 = vld [vmem:[#allocation10 + $0x70] sm:$0xff]  ;;  %v2307_v33 = vld [vmem:[#allocation19] sm:$0xff] }
 0x4cf   :  { %5927 = vmatprep.subr.bf16.mxu0 %v5926_v39 }
 0x4d0   :  { %5929 = vmatpush3.bf16.msra.mxu0 %v5926_v39  ;;  %v2041_v39 = vld [vmem:[#allocation11] sm:$0xff] }
 0x4d1   :  { %5963 = vmatprep.subr.bf16.mxu0 %v5962_v28  ;;  %2045 = vperm.xlu1 %6375, %v2041_v39   ;;  %v2309_v39 = vld [vmem:[#allocation19 + $0x10] sm:$0xff] }
 0x4d3   :  { %5236 = vmatmul.mubr.msk.f32.vlgmr.msra.gmra.mrb[4].mxu0 %vm632_vm6, %v1067_v42  ;;  %v2314_v42 = vld [vmem:[#allocation20 + $0x18] sm:$0xff] }
 0x4d4   :  { %5965 = vmatpush3.bf16.msra.mxu0 %v5962_v28  ;;  %5277 = vmatprep.mubr.msk.f32.mxu0 %vm632_vm6, %v1244_v43  ;;  %v1696_v28 = vld [vmem:[#allocation5 + $0x3d0] sm:$0xff]  ;;  %v4216_v43 = vld [vmem:[#allocation22 + $0x8] sm:$0xff] }
 0x4d5   :  { %5967 = vmatprep.subr.bf16.mxu0 %v5966_v44  ;;  %v6058_v30 = vpack.c.bf16 %v1697_v29, %v1696_v28  ;;  %2050 = vperm.xlu1 %6375, %v2042_v40   ;;  %v2310_v40 = vld [vmem:[#allocation19 + $0x18] sm:$0xff] }
 0x4d9   :  { %2322 = vperm.xlu1 %6375, %v2312_v41   ;;  %v2448_v41 = vld [vmem:[#allocation17] sm:$0xff] }
 0x4db   :  { %5278 = vmatmul.mubr.msk.f32.vlgmr.msra.gmra.mrb[4].mxu0 %vm632_vm6, %v1245_v47 }
 0x4dc   :  { %5969 = vmatpush3.bf16.msra.mxu0 %v5966_v44  ;;  %5312 = vmatprep.mubr.f32.mxu0 %v7096_v14  ;;  %v4218_v44 = vld [vmem:[#allocation22 + $0x18] sm:$0xff] }
 0x4dd   :  { %5971 = vmatprep.subr.bf16.mxu0 %v5970_v48  ;;  %2332 = vperm.xlu1 %6375, %v2314_v42   ;;  %v2449_v42 = vld [vmem:[#allocation17 + $0x8] sm:$0xff] }
 0x4e0   :  { %5973 = vmatpush3.bf16.msra.mxu0 %v5970_v48  ;;  %v1956_v48 = vld [vmem:[#allocation10 + $0x80] sm:$0xff] }
 0x4e1   :  { %5975 = vmatprep.subr.bf16.mxu0 %v5974_v51  ;;  %4226 = vperm.xlu1 %6375, %v4216_v43   ;;  %v2844_v43 = vld [vmem:[#allocation17 + $0x40] sm:$0xff] }
 0x4e4   :  { %5977 = vmatpush3.bf16.msra.mxu0 %v5974_v51  ;;  %v2138_v51 = vld [vmem:[#allocation14] sm:$0xff] }
 0x4e5   :  { %5979 = vmatprep.subr.bf16.mxu0 %v5978_v54  ;;  %4236 = vperm.xlu1 %6375, %v4218_v44   ;;  %v6141_v44 = vpack.c.bf16 %v2449_v42, %v2448_v41  ;;  %v3628_v41 = vld [vmem:[#allocation17 + $0xc0] sm:$0xff]  ;;  %v3629_v42 = vld [vmem:[#allocation17 + $0xc8] sm:$0xff] }
 0x4e8   :  { %5981 = vmatpush3.bf16.msra.mxu0 %v5978_v54  ;;  %v6114_v54 = vpack.c.bf16 %v2139_v52, %v2138_v51  ;;  %v2847_v51 = vld [vmem:[#allocation17 + $0x58] sm:$0xff] }
 0x4e9   :  { %5983 = vmatprep.subr.bf16.mxu0 %v5982_v57 }
 0x4ec   :  { %5985 = vmatpush3.bf16.msra.mxu0 %v5982_v57  ;;  %v2143_v57 = vld [vmem:[#allocation14 + $0x28] sm:$0xff] }
 0x4ed   :  { %5987 = vmatprep.subr.bf16.mxu0 %v5986_v60  ;;  %v6120_v58 = vpack.c.bf16 %v2143_v57, %v2142_v56  ;;  %v3041_v56 = vld [vmem:[#allocation17 + $0x68] sm:$0xff] }
 0x4f0   :  { %5989 = vmatpush3.bf16.msra.mxu0 %v5986_v60  ;;  %v2145_v60 = vld [vmem:[#allocation14 + $0x38] sm:$0xff] }
 0x4f1   :  { %5991 = vmatprep.subr.bf16.mxu0 %v5990_v63  ;;  %v6123_v61 = vpack.c.bf16 %v2145_v60, %v2144_v59  ;;  %v2318_v59 = vpop.permute.xlu0 %2317 }
 0x4f4   :  { %5993 = vmatpush3.bf16.msra.mxu0 %v5990_v63  ;;  %v2147_v63 = vld [vmem:[#allocation14 + $0x48] sm:$0xff] }
 0x4f5   :  { %5995 = vmatprep.subr.bf16.mxu0 %v5994_v3  ;;  %v6126_v1 = vpack.c.bf16 %v2147_v63, %v2146_v62 }
 0x4f8   :  { %5997 = vmatpush3.bf16.msra.mxu0 %v5994_v3  ;;  %v2149_v3 = vld [vmem:[#allocation14 + $0x58] sm:$0xff] }
 0x4fb   :  { %5313 = vmatmul.mubr.f32.vlgmr.msra.gmra.mrb[8].mxu0 %v7098_v15 }
 0x4fc   :  { %5319 = vmatprep.mubr.msk.f32.mxu0 %vm632_vm6, %v1422_v4  ;;  %v6129_v4 = vpack.c.bf16 %v2149_v3, %v2148_v2 }
 0x550   :  { %v2046_v8 = vpop.permute.xlu1 %2045 }
 0x554   :  { %v2051_v9 = vpop.permute.xlu1 %2050 }
 0x5ce   :  { %v5314_v5 = vpop.f32.mrb[8].mxu0 }
 0x5cf   :  { %v1412_v6 = vpop.f32.mrb[9].mxu0 }
 0x5d0   :  { %v5998_v7 = vpack.c.bf16 %v5314_v5, %v1412_v6  ;;  %v2150_v5 = vld [vmem:[#allocation14 + $0x60] sm:$0xff]  ;;  %v2151_v6 = vld [vmem:[#allocation14 + $0x68] sm:$0xff] }
 0x5d2   :  { %5999 = vmatprep.subr.bf16.mxu0 %v5998_v7 }
 0x5d3   :  { %6001 = vmatpush3.bf16.msra.mxu0 %v5998_v7  ;;  %v6132_v7 = vpack.c.bf16 %v2151_v6, %v2150_v5  ;;  %v2557_v5 = vld [vmem:[#allocation17 + $0x30] sm:$0xff]  ;;  %v2558_v6 = vld [vmem:[#allocation17 + $0x38] sm:$0xff] }
 0x5d4   :  { %6035 = vmatprep.subr.bf16.mxu0 %v7122_v31 }
 0x5d6   :  { %5320 = vmatmul.mubr.msk.f32.vlgmr.msra.gmra.mrb[4].mxu0 %vm632_vm6, %v1423_v10 }
 0x5d7   :  { %6037 = vmatpush3.bf16.msra.mxu0 %v7122_v31  ;;  %5361 = vmatprep.mubr.msk.f32.mxu0 %vm632_vm6, %v1600_v11  ;;  %v1698_v31 = vld [vmem:[#allocation5 + $0x3e0] sm:$0xff] }
 0x5d8   :  { %6039 = vmatprep.subr.bf16.mxu0 %v6038_v12 }
 0x5de   :  { %5362 = vmatmul.mubr.msk.f32.vlgmr.msra.gmra.mrb[4].mxu0 %vm632_vm6, %v1601_v17 }
 0x5df   :  { %6041 = vmatpush3.bf16.msra.mxu0 %v6038_v12  ;;  %5396 = vmatprep.mubr.f32.mxu0 %v7096_v14  ;;  %v6062_v14 = vpack.c.bf16 %v1699_v32, %v1698_v31  ;;  %v2225_v32 = vld [vmem:[#allocation16 + $0x8] sm:$0xff] }
 0x5e0   :  { %6043 = vmatprep.subr.bf16.mxu0 %v6042_v18 }
 0x5e3   :  { %6045 = vmatpush3.bf16.msra.mxu0 %v6042_v18 }
 0x5e4   :  { %6047 = vmatprep.subr.bf16.mxu0 %v6046_v21 }
 0x5e7   :  { %6049 = vmatpush3.bf16.msra.mxu0 %v6046_v21 }
 0x5e8   :  { %6051 = vmatprep.subr.bf16.mxu0 %v6050_v24 }
 0x5eb   :  { %6053 = vmatpush3.bf16.msra.mxu0 %v6050_v24  ;;  %v2152_v24 = vld [vmem:[#allocation14 + $0x70] sm:$0xff] }
 0x5ec   :  { %6055 = vmatprep.subr.bf16.mxu0 %v6054_v27  ;;  %v6135_v26 = vpack.c.bf16 %v2153_v25, %v2152_v24  ;;  %v3236_v25 = vld [vmem:[#allocation17 + $0x80] sm:$0xff] }
 0x5ef   :  { %6057 = vmatpush3.bf16.msra.mxu0 %v6054_v27 }
 0x5f0   :  { %6059 = vmatprep.subr.bf16.mxu0 %v6058_v30 }
 0x5f3   :  { %6061 = vmatpush3.bf16.msra.mxu0 %v6058_v30  ;;  %v2224_v30 = vld [vmem:[#allocation16] sm:$0xff] }
 0x5f4   :  { %6063 = vmatprep.subr.bf16.mxu0 %v6062_v14 }
 0x5f7   :  { %6065 = vmatpush3.bf16.msra.mxu0 %v6062_v14 }
 0x5f8   :  { %6067 = vmatprep.subr.bf16.mxu0 %v6066_v37 }
 0x5fb   :  { %6069 = vmatpush3.bf16.msra.mxu0 %v6066_v37 }
 0x5fe   :  { %5397 = vmatmul.mubr.f32.vlgmr.msra.gmra.mrb[10].mxu0 %v7098_v15  ;;  %v1779_v15 = vld [vmem:[#allocation10 + $0x78] sm:$0xff] }
 0x5ff   :  { %5403 = vmatprep.mubr.msk.f32.mxu0 %vm632_vm6, %v1778_v38  ;;  %v2308_v38 = vld [vmem:[#allocation19 + $0x8] sm:$0xff] }
 0x6d1   :  { %v5398_v45 = vpop.f32.mrb[10].mxu0 }
 0x6d2   :  { %v1768_v46 = vpop.f32.mrb[11].mxu0 }
 0x6d3   :  { %v6070_v47 = vpack.c.bf16 %v5398_v45, %v1768_v46  ;;  %v2845_v45 = vld [vmem:[#allocation17 + $0x48] sm:$0xff] }
 0x6d4   :  { %v6173_v46 = vpack.c.bf16 %v2845_v45, %v2844_v43  ;;  %v6237_v43 = vpack.c.bf16 %v3629_v42, %v3628_v41  ;;  %v3631_v45 = vld [vmem:[#allocation17 + $0xd8] sm:$0xff]  ;;  %v4584_v42 = vld [vmem:[%s7442_s13 + $0x40] sm:$0xff] }
 0x6d5   :  { %6071 = vmatprep.subr.bf16.mxu0 %v6070_v47 }
 0x6d6   :  { %6073 = vmatpush3.bf16.msra.mxu0 %v6070_v47  ;;  %v2450_v47 = vld [vmem:[#allocation17 + $0x10] sm:$0xff] }
 0x6d7   :  { %6107 = vmatprep.subr.bf16.mxu0 %v7124_v35 }
 0x6d9   :  { %5404 = vmatmul.mubr.msk.f32.vlgmr.msra.gmra.mrb[4].mxu0 %vm632_vm6, %v1779_v15  ;;  %v2451_v15 = vld [vmem:[#allocation17 + $0x18] sm:$0xff] }
 0x6da   :  { %6109 = vmatpush3.bf16.msra.mxu0 %v7124_v35  ;;  %5445 = vmatprep.mubr.msk.f32.mxu0 %vm632_vm6, %v1956_v48  ;;  %v6117_v35 = vpack.c.bf16 %v2141_v55, %v2140_v53  ;;  %v2846_v48 = vld [vmem:[#allocation17 + $0x50] sm:$0xff]  ;;  %v2555_v53 = vld [vmem:[#allocation17 + $0x20] sm:$0xff] }
 0x6db   :  { %6113 = vmatprep.subr.bf16.mxu0 %v6766_v50  ;;  %v6177_v52 = vpack.c.bf16 %v2847_v51, %v2846_v48  ;;  %v3040_v55 = vld [vmem:[#allocation17 + $0x60] sm:$0xff]  ;;  %v3827_v51 = vld [vmem:[#allocation17 + $0xf8] sm:$0xff] }
 0x6dc   :  { %v6189_v57 = vpack.c.bf16 %v3041_v56, %v3040_v55  ;;  %v4023_v56 = vld [vmem:[#allocation17 + $0x118] sm:$0xff] }
 0x6e1   :  { %5446 = vmatmul.mubr.msk.f32.vlgmr.msra.gmra.mrb[4].mxu0 %vm632_vm6, %v1957_v49  ;;  %v6145_v49 = vpack.c.bf16 %v2451_v15, %v2450_v47  ;;  %v3824_v47 = vld [vmem:[#allocation17 + $0xe0] sm:$0xff]  ;;  %v3825_v15 = vld [vmem:[#allocation17 + $0xe8] sm:$0xff] }
 0x6e2   :  { %5487 = vmatprep.mubr.msk.f32.mxu0 %vm6764_vm0, %v6763_v0  ;;  %6115 = vmatpush3.bf16.msra.mxu0 %v6114_v54  ;;  %v2556_v54 = vld [vmem:[#allocation17 + $0x28] sm:$0xff]  ;;  %v6253_v48 = vpack.c.bf16 %v3825_v15, %v3824_v47  ;;  %v4586_v47 = vld [vmem:[%s7442_s13 + $0x50] sm:$0xff] }
 0x6e3   :  { %6116 = vmatprep.subr.bf16.mxu0 %v6766_v50 }
 0x6e6   :  { %6118 = vmatpush3.bf16.msra.mxu0 %v6117_v35  ;;  %v6149_v35 = vpack.c.bf16 %v2556_v54, %v2555_v53  ;;  %v4020_v53 = vld [vmem:[#allocation17 + $0x100] sm:$0xff]  ;;  %v4021_v54 = vld [vmem:[#allocation17 + $0x108] sm:$0xff] }
 0x6e7   :  { %6119 = vmatprep.subr.bf16.mxu0 %v6766_v50  ;;  %v6269_v55 = vpack.c.bf16 %v4021_v54, %v4020_v53 }
 0x6ea   :  { %6121 = vmatpush3.bf16.msra.mxu0 %v6120_v58  ;;  %v2323_v58 = vpop.permute.xlu1 %2322 }
 0x6eb   :  { %6122 = vmatprep.subr.bf16.mxu0 %v6766_v50 }
 0x6ee   :  { %6124 = vmatpush3.bf16.msra.mxu0 %v6123_v61  ;;  %v2333_v2 = vpop.permute.xlu1 %2332 }
 0x6ef   :  { %6125 = vmatprep.subr.bf16.mxu0 %v6766_v50 }
 0x6f2   :  { %6127 = vmatpush3.bf16.msra.mxu0 %v6126_v1 }
 0x6f3   :  { %6128 = vmatprep.subr.bf16.mxu0 %v6766_v50 }
 0x6f6   :  { %6130 = vmatpush3.bf16.msra.mxu0 %v6129_v4 }
 0x6f7   :  { %6131 = vmatprep.subr.bf16.mxu0 %v6766_v50 }
 0x6fa   :  { %6133 = vmatpush3.bf16.msra.mxu0 %v6132_v7  ;;  %v2328_v7 = vpop.permute.xlu0 %2327 }
 0x6fb   :  { %6134 = vmatprep.subr.bf16.mxu0 %v6766_v50 }
 0x6fe   :  { %6136 = vmatpush3.bf16.msra.mxu0 %v6135_v26  ;;  %v3237_v26 = vld [vmem:[#allocation17 + $0x88] sm:$0xff] }
 0x6ff   :  { %6174 = vmatprep.subr.bf16.mxu0 %v6173_v46 }
 0x7b4   :  { %v5447_v10 = vpop.f32.mrb[4].mxu0 }
 0x7b5   :  { %v2054_v11 = vadd.f32 %v5447_v10, %v2051_v9  ;;  %v2030_v12 = vpop.f32.mrb[5].mxu0 }
 0x7b6   :  { %v2053_v13 = vadd.f32 %v2046_v8, %v2030_v12  ;;  %v3043_v12 = vld [vmem:[#allocation17 + $0x78] sm:$0xff] }
 0x7b7   :  { %vm2056_vm7 = vcmp.ge.f32.partialorder %v2054_v11, 0.0  ;;  %v2058_v16 = vmul.f32 0.2, %v2054_v11 }
 0x7b8   :  { %vm2055_vm8 = vcmp.ge.f32.partialorder %v2053_v13, 0.0  ;;  %v2057_v17 = vmul.f32 0.2, %v2053_v13 }
 0x7b9   :  { %v2060_v18 = vsel %vm2056_vm7, %v2054_v11, %v2058_v16  ;;  %v3042_v11 = vld [vmem:[#allocation17 + $0x70] sm:$0xff] }
 0x7ba   :  { %v2062_v19 = vmul.f32 1.4142135, %v2060_v18  ;;  %v2059_v20 = vsel %vm2055_vm8, %v2053_v13, %v2057_v17 }
 0x7bb   :  { %v2061_v21 = vmul.f32 1.4142135, %v2059_v20 }
 0x7bd   :  { %v6111_v22 = vpack.c.bf16 %v2062_v19, %v2061_v21  ;;  %v6153_v19 = vpack.c.bf16 %v2558_v6, %v2557_v5 }
 0x7bf   :  { %6112 = vmatpush3.bf16.msra.mxu1 %v6111_v22  ;;  %v6193_v22 = vpack.c.bf16 %v3043_v12, %v3042_v11 }
 0x7c2   :  { %5453 = vmatmul.mubr.msk.f32.vlgmr.msra.gmra.mrb[12].mxu1 %vm632_vm6, %v2063_v23 }
 0x7c3   :  { %5492 = vmatprep.mubr.msk.f32.mxu1 %vm354_vm3, %v2224_v30  ;;  %v3238_v30 = vld [vmem:[#allocation17 + $0x90] sm:$0xff] }
 0x895   :  { %v2133_v27 = vpop.f32.mrb[12].mxu1 }
 0x896   :  { %v2137_v28 = vadd.f32 %v2133_v27, %v7091_v34  ;;  %v5454_v29 = vpop.f32.mrb[13].mxu1 }
 0x897   :  { %v6205_v29 = vpack.c.bf16 %v3237_v26, %v3236_v25  ;;  %v4570_v25 = vld [vmem:[%s7442_s13 + $0x30] sm:$0xff] }
 0x898   :  { %5488 = vmatmul.mubr.f32.vlgmr.msra.gmra.mrb[12].mxu0 %v2137_v28 }
 0x899   :  { %6176 = vmatpush3.bf16.msra.mxu0 %v6173_v46 }
 0x89a   :  { %6178 = vmatprep.subr.bf16.mxu0 %v6177_v52 }
 0x89d   :  { %6180 = vmatpush3.bf16.msra.mxu0 %v6177_v52 }
 0x89e   :  { %6190 = vmatprep.subr.bf16.mxu0 %v6189_v57 }
 0x96b   :  { %v2220_v31 = vpop.f32.mrb[12].mxu0 }
 0x96c   :  { %v5489_v14 = vpop.f32.mrb[13].mxu0  ;;  %5490 = vmatprep.subr.mxu1 %v2220_v31 }
 0x96d   :  { %5491 = vmatpush3.msra.mxu1 %v2220_v31  ;;  %v3239_v31 = vld [vmem:[#allocation17 + $0x98] sm:$0xff]  ;;  %v3432_v14 = vld [vmem:[#allocation17 + $0xa0] sm:$0xff] }
 0x96e   :  { %5493 = vmatmul.mubr.msk.f32.vlgmr.msra.gmra.mrb[14].mxu1 %vm354_vm3, %v2225_v32  ;;  %v6209_v32 = vpack.c.bf16 %v3239_v31, %v3238_v30  ;;  %v2550_v30 = vld [vmem:[%s7442_s13] sm:$0xff] }
 0x96f   :  { %5499 = vmatprep.mubr.msk.f32.mxu1 %vm632_vm6, %v2307_v33  ;;  %v3433_v33 = vld [vmem:[#allocation17 + $0xa8] sm:$0xff] }
 0xa41   :  { %v7162_v36 = vpop.f32.mrb[14].mxu1 }
 0xa42   :  { %v7164_v37 = vpop.f32.mrb[15].mxu1 }
 0xa43   :  { %v6137_v34 = vpack.c.bf16 %v7162_v36, %v7164_v37 }
 0xa45   :  { %6138 = vmatprep.subr.bf16.mxu1 %v6137_v34 }
 0xa46   :  { %6140 = vmatpush3.bf16.msra.mxu1 %v6137_v34  ;;  %v6221_v34 = vpack.c.bf16 %v3433_v33, %v3432_v14  ;;  %v2551_v14 = vld [vmem:[%s7442_s13 + $0x8] sm:$0xff] }
 0xa47   :  { %6142 = vmatprep.subr.bf16.mxu1 %v6141_v44 }
 0xa49   :  { %5500 = vmatmul.mubr.msk.f32.vlgmr.msra.gmra.mrb[16].mxu1 %vm632_vm6, %v2308_v38  ;;  %v3434_v38 = vld [vmem:[#allocation17 + $0xb0] sm:$0xff] }
 0xa4a   :  { %5502 = vmatprep.mubr.msk.f32.mxu1 %vm632_vm6, %v2309_v39  ;;  %6144 = vmatpush3.bf16.msra.mxu1 %v6141_v44  ;;  %v3435_v39 = vld [vmem:[#allocation17 + $0xb8] sm:$0xff]  ;;  %v3630_v44 = vld [vmem:[#allocation17 + $0xd0] sm:$0xff] }
 0xa4b   :  { %6146 = vmatprep.subr.bf16.mxu1 %v6145_v49  ;;  %v6241_v46 = vpack.c.bf16 %v3631_v45, %v3630_v44  ;;  %v4585_v45 = vld [vmem:[%s7442_s13 + $0x48] sm:$0xff] }
 0xa4d   :  { %5503 = vmatmul.mubr.msk.f32.gmra.mrb[18].mxu1 %vm632_vm6, %v2310_v40  ;;  %v6225_v40 = vpack.c.bf16 %v3435_v39, %v3434_v38 }
 0xa4e   :  { %6148 = vmatpush3.bf16.msra.mxu1 %v6145_v49  ;;  %v3826_v49 = vld [vmem:[#allocation17 + $0xf0] sm:$0xff] }
 0xa4f   :  { %6150 = vmatprep.subr.bf16.mxu1 %v6149_v35  ;;  %v6257_v52 = vpack.c.bf16 %v3827_v51, %v3826_v49  ;;  %v4587_v49 = vld [vmem:[%s7442_s13 + $0x58] sm:$0xff] }
 0xb1c   :  { %v5501_v60 = vpop.f32.mrb[16].mxu1 }
 0xb1d   :  { %v2419_v61 = vadd.f32 %v5501_v60, %v2323_v58  ;;  %v2413_v62 = vpop.f32.mrb[17].mxu1  ;;  %v4568_v58 = vld [vmem:[%s7442_s13 + $0x20] sm:$0xff] }
 0xb1e   :  { %v2414_v63 = vadd.f32 %v2413_v62, %v2318_v59 }
 0xb1f   :  { %vm2433_vm9 = vcmp.ge.f32.partialorder %v2419_v61, 0.0  ;;  %v2437_v1 = vmul.f32 0.2, %v2419_v61 }
 0xb20   :  { %vm2432_vm10 = vcmp.ge.f32.partialorder %v2414_v63, 0.0  ;;  %v2436_v3 = vmul.f32 0.2, %v2414_v63  ;;  %v5504_v4 = vpop.f32.mrb[18].mxu1 }
 0xb21   :  { %v2441_v8 = vsel %vm2433_vm9, %v2419_v61, %v2437_v1  ;;  %v2429_v9 = vadd.f32 %v5504_v4, %v2333_v2  ;;  %v2423_v10 = vpop.f32.mrb[19].mxu1 }
 0xb22   :  { %v2440_v13 = vsel %vm2432_vm10, %v2414_v63, %v2436_v3  ;;  %v2424_v16 = vadd.f32 %v2423_v10, %v2328_v7  ;;  %v7173_v20 = vmul.f32 1.4142135, %v2441_v8 }
 0xb23   :  { %v7171_v17 = vmul.f32 1.4142135, %v2440_v13  ;;  %vm2435_vm12 = vcmp.ge.f32.partialorder %v2429_v9, 0.0  ;;  %v2439_v18 = vmul.f32 0.2, %v2429_v9 }
 0xb24   :  { %vm2434_vm13 = vcmp.ge.f32.partialorder %v2424_v16, 0.0  ;;  %v2438_v21 = vmul.f32 0.2, %v2424_v16 }
 0xb25   :  { %v2443_v23 = vsel %vm2435_vm12, %v2429_v9, %v2439_v18  ;;  %5513 = vmatprep.mubr.msk.f32.mxu1 %vm2452_vm11, %v7171_v17  ;;  %5569 = vmatprep.mubr.msk.f32.mxu0 %vm2452_vm11, %v7171_v17 }
 0xb26   :  { %v2442_v24 = vsel %vm2434_vm13, %v2424_v16, %v2438_v21  ;;  %5514 = vmatmul.mubr.msk.f32.vlgmr.msra.gmra.mrb[20].mxu1 %vm2452_vm11, %v7173_v20  ;;  %5570 = vmatmul.mubr.msk.f32.vlgmr.msra.gmra.mrb[14].mxu0 %vm2452_vm11, %v7173_v20  ;;  %v7185_v28 = vmul.f32 1.4142135, %v2443_v23  ;;  %v4569_v23 = vld [vmem:[%s7442_s13 + $0x28] sm:$0xff] }
 0xb27   :  { %v7183_v27 = vmul.f32 1.4142135, %v2442_v24  ;;  %6152 = vmatpush3.bf16.msra.mxu1 %v6149_v35  ;;  %6192 = vmatpush3.bf16.msra.mxu0 %v6189_v57  ;;  %v4022_v35 = vld [vmem:[#allocation17 + $0x110] sm:$0xff] }
 0xb28   :  { %6154 = vmatprep.subr.bf16.mxu1 %v6153_v19  ;;  %6194 = vmatprep.subr.bf16.mxu0 %v6193_v22  ;;  %v6273_v57 = vpack.c.bf16 %v4023_v56, %v4022_v35  ;;  %v4598_v56 = vld [vmem:[%s7442_s13 + $0x70] sm:$0xff] }
 0xb29   :  { %5516 = vmatprep.mubr.msk.f32.mxu1 %vm2452_vm11, %v7183_v27  ;;  %5572 = vmatprep.mubr.msk.f32.mxu0 %vm2452_vm11, %v7183_v27 }
 0xb2a   :  { %5517 = vmatmul.mubr.msk.f32.gmra.mrb[22].mxu1 %vm2452_vm11, %v7185_v28  ;;  %5573 = vmatmul.mubr.msk.f32.gmra.mrb[16].mxu0 %vm2452_vm11, %v7185_v28 }
 0xb2b   :  { %6156 = vmatpush3.bf16.msra.mxu1 %v6153_v19  ;;  %5527 = vmatprep.mubr.msk.f32.mxu1 %vm2452_vm11, %v7171_v17 }
 0xb2c   :  { %6196 = vmatpush3.bf16.msra.mxu0 %v6193_v22  ;;  %5597 = vmatprep.mubr.msk.f32.mxu0 %vm2452_vm11, %v7171_v17 }
 0xb2d   :  { %6206 = vmatprep.subr.bf16.mxu0 %v6205_v29 }
 0xb2e   :  { %5528 = vmatmul.mubr.msk.f32.vlgmr.msra.gmra.mrb[24].mxu1 %vm2452_vm11, %v7173_v20 }
 0xb2f   :  { %5598 = vmatmul.mubr.msk.f32.vlgmr.msra.gmra.mrb[18].mxu0 %vm2452_vm11, %v7173_v20  ;;  %5530 = vmatprep.mubr.msk.f32.mxu1 %vm2452_vm11, %v7183_v27 }
 0xb30   :  { %5600 = vmatprep.mubr.msk.f32.mxu0 %vm2452_vm11, %v7183_v27  ;;  %6208 = vmatpush3.bf16.msra.mxu0 %v6205_v29 }
 0xb31   :  { %6210 = vmatprep.subr.bf16.mxu0 %v6209_v32 }
 0xb32   :  { %5531 = vmatmul.mubr.msk.f32.gmra.mrb[26].mxu1 %vm2452_vm11, %v7185_v28 }
 0xb33   :  { %5601 = vmatmul.mubr.msk.f32.gmra.mrb[20].mxu0 %vm2452_vm11, %v7185_v28  ;;  %5541 = vmatprep.mubr.msk.f32.mxu1 %vm2452_vm11, %v4568_v58 }
 0xb34   :  { %6212 = vmatpush3.bf16.msra.mxu0 %v6209_v32  ;;  %5625 = vmatprep.mubr.msk.f32.mxu0 %vm2452_vm11, %v7171_v17 }
 0xb35   :  { %6222 = vmatprep.subr.bf16.mxu0 %v6221_v34 }
 0xb37   :  { %5626 = vmatmul.mubr.msk.f32.vlgmr.msra.gmra.mrb[22].mxu0 %vm2452_vm11, %v7173_v20 }
 0xb38   :  { %5628 = vmatprep.mubr.msk.f32.mxu0 %vm2452_vm11, %v7183_v27  ;;  %6224 = vmatpush3.bf16.msra.mxu0 %v6221_v34  ;;  %v2552_v34 = vld [vmem:[%s7442_s13 + $0x10] sm:$0xff] }
 0xb39   :  { %6226 = vmatprep.subr.bf16.mxu0 %v6225_v40 }
 0xb3b   :  { %5629 = vmatmul.mubr.msk.f32.gmra.mrb[24].mxu0 %vm2452_vm11, %v7185_v28 }
 0xb3c   :  { %6228 = vmatpush3.bf16.msra.mxu0 %v6225_v40  ;;  %5653 = vmatprep.mubr.msk.f32.mxu0 %vm2452_vm11, %v7171_v17  ;;  %v2553_v40 = vld [vmem:[%s7442_s13 + $0x18] sm:$0xff] }
 0xb3d   :  { %6238 = vmatprep.subr.bf16.mxu0 %v6237_v43 }
 0xb3f   :  { %5654 = vmatmul.mubr.msk.f32.vlgmr.msra.gmra.mrb[26].mxu0 %vm2452_vm11, %v7173_v20 }
 0xb40   :  { %5656 = vmatprep.mubr.msk.f32.mxu0 %vm2452_vm11, %v7183_v27  ;;  %6240 = vmatpush3.bf16.msra.mxu0 %v6237_v43 }
 0xb41   :  { %6242 = vmatprep.subr.bf16.mxu0 %v6241_v46 }
 0xb43   :  { %5657 = vmatmul.mubr.msk.f32.gmra.mrb[28].mxu0 %vm2452_vm11, %v7185_v28 }
 0xb44   :  { %6244 = vmatpush3.bf16.msra.mxu0 %v6241_v46  ;;  %5681 = vmatprep.mubr.msk.f32.mxu0 %vm2452_vm11, %v7171_v17 }
 0xb45   :  { %6254 = vmatprep.subr.bf16.mxu0 %v6253_v48 }
 0xb47   :  { %5682 = vmatmul.mubr.msk.f32.vlgmr.msra.gmra.mrb[30].mxu0 %vm2452_vm11, %v7173_v20 }
 0xb48   :  { %5684 = vmatprep.mubr.msk.f32.mxu0 %vm2452_vm11, %v7183_v27  ;;  %6256 = vmatpush3.bf16.msra.mxu0 %v6253_v48 }
 0xb49   :  { %6258 = vmatprep.subr.bf16.mxu0 %v6257_v52 }
 0xb4b   :  { %5685 = vmatmul.mubr.msk.f32.gmra.mrb[32].mxu0 %vm2452_vm11, %v7185_v28 }
 0xb4c   :  { %6260 = vmatpush3.bf16.msra.mxu0 %v6257_v52  ;;  %5709 = vmatprep.mubr.msk.f32.mxu0 %vm2452_vm11, %v7171_v17  ;;  %v4596_v52 = vld [vmem:[%s7442_s13 + $0x60] sm:$0xff] }
 0xb4d   :  { %6270 = vmatprep.subr.bf16.mxu0 %v6269_v55 }
 0xb4f   :  { %5710 = vmatmul.mubr.msk.f32.vlgmr.msra.gmra.mrb[34].mxu0 %vm2452_vm11, %v7173_v20 }
 0xb50   :  { %5712 = vmatprep.mubr.msk.f32.mxu0 %vm2452_vm11, %v7183_v27  ;;  %6272 = vmatpush3.bf16.msra.mxu0 %v6269_v55  ;;  %v4597_v55 = vld [vmem:[%s7442_s13 + $0x68] sm:$0xff] }
 0xb51   :  { %6274 = vmatprep.subr.bf16.mxu0 %v6273_v57 }
 0xb53   :  { %5713 = vmatmul.mubr.msk.f32.gmra.mrb[36].mxu0 %vm2452_vm11, %v7185_v28 }
 0xb54   :  { %6276 = vmatpush3.bf16.msra.mxu0 %v6273_v57  ;;  %5737 = vmatprep.mubr.msk.f32.mxu0 %vm2452_vm11, %v7171_v17 }
 0xb57   :  { %5738 = vmatmul.mubr.msk.f32.vlgmr.msra.gmra.mrb[38].mxu0 %vm2452_vm11, %v7173_v20 }
 0xb58   :  { %5740 = vmatprep.mubr.msk.f32.mxu0 %vm2452_vm11, %v7183_v27 }
 0xb5b   :  { %5741 = vmatmul.mubr.msk.f32.gmra.mrb[40].mxu0 %vm2452_vm11, %v7185_v28  ;;  %v4571_v28 = vld [vmem:[%s7442_s13 + $0x38] sm:$0xff] }
 0xbf9   :  { %v5515_v59 = vpop.f32.mrb[20].mxu1  ;;  %v5571_v60 = vpop.f32.mrb[14].mxu0 }
 0xbfa   :  { %v2531_v61 = vpop.f32.mrb[21].mxu1  ;;  %v2914_v62 = vpop.f32.mrb[15].mxu0 }
 0xbfb   :  { %v6165_v63 = vpack.c.bf16 %v5515_v59, %v2531_v61  ;;  %v6181_v1 = vpack.c.bf16 %v5571_v60, %v2914_v62  ;;  %v4599_v59 = vld [vmem:[%s7442_s13 + $0x78] sm:$0xff]  ;;  %v4608_v61 = vld [vmem:[%s7442_s13 + $0x80] sm:$0xff] }
 0xbfd   :  { %v5518_v2 = vpop.f32.mrb[22].mxu1  ;;  %v5574_v3 = vpop.f32.mrb[16].mxu0 }
 0xbfe   :  { %v2541_v4 = vpop.f32.mrb[23].mxu1  ;;  %v2924_v5 = vpop.f32.mrb[17].mxu0 }
 0xbff   :  { %v6169_v6 = vpack.c.bf16 %v5518_v2, %v2541_v4  ;;  %v6185_v7 = vpack.c.bf16 %v5574_v3, %v2924_v5  ;;  %v4610_v3 = vld [vmem:[%s7442_s13 + $0x90] sm:$0xff] }
 0xc01   :  { %v5529_v8 = vpop.f32.mrb[24].mxu1 }
 0xc02   :  { %v5599_v9 = vpop.f32.mrb[18].mxu0  ;;  %v2625_v10 = vpop.f32.mrb[25].mxu1 }
 0xc03   :  { %v6157_v11 = vpack.c.bf16 %v5529_v8, %v2625_v10  ;;  %v3110_v12 = vpop.f32.mrb[19].mxu0  ;;  %v4620_v8 = vld [vmem:[%s7442_s13 + $0xa0] sm:$0xff]  ;;  %v4621_v10 = vld [vmem:[%s7442_s13 + $0xa8] sm:$0xff] }
 0xc04   :  { %v6197_v13 = vpack.c.bf16 %v5599_v9, %v3110_v12  ;;  %v4623_v12 = vld [vmem:[%s7442_s13 + $0xb8] sm:$0xff] }
 0xc05   :  { %v5532_v16 = vpop.f32.mrb[26].mxu1  ;;  %6158 = vmatprep.subr.bf16.mxu1 %v6157_v11 }
 0xc06   :  { %v5602_v17 = vpop.f32.mrb[20].mxu0  ;;  %v2635_v18 = vpop.f32.mrb[27].mxu1  ;;  %6160 = vmatpush3.bf16.msra.mxu1 %v6157_v11  ;;  %v4622_v11 = vld [vmem:[%s7442_s13 + $0xb0] sm:$0xff] }
 0xc07   :  { %v6161_v19 = vpack.c.bf16 %v5532_v16, %v2635_v18  ;;  %v3120_v20 = vpop.f32.mrb[21].mxu0  ;;  %v4633_v16 = vld [vmem:[%s7442_s13 + $0xc8] sm:$0xff]  ;;  %v4635_v18 = vld [vmem:[%s7442_s13 + $0xd8] sm:$0xff] }
 0xc08   :  { %v6201_v21 = vpack.c.bf16 %v5602_v17, %v3120_v20  ;;  %v4634_v17 = vld [vmem:[%s7442_s13 + $0xd0] sm:$0xff]  ;;  %v4645_v20 = vld [vmem:[%s7442_s13 + $0xe8] sm:$0xff] }
 0xc09   :  { %6162 = vmatprep.subr.bf16.mxu1 %v6161_v19 }
 0xc0a   :  { %v5627_v22 = vpop.f32.mrb[22].mxu0  ;;  %6164 = vmatpush3.bf16.msra.mxu1 %v6161_v19  ;;  %v4644_v19 = vld [vmem:[%s7442_s13 + $0xe0] sm:$0xff] }
 0xc0b   :  { %v3306_v24 = vpop.f32.mrb[23].mxu0  ;;  %6166 = vmatprep.subr.bf16.mxu1 %v6165_v63 }
 0xc0c   :  { %v6213_v26 = vpack.c.bf16 %v5627_v22, %v3306_v24  ;;  %v4647_v22 = vld [vmem:[%s7442_s13 + $0xf8] sm:$0xff]  ;;  %v4657_v24 = vld [vmem:[%s7442_s13 + $0x108] sm:$0xff] }
 0xc0d   :  { %5542 = vmatmul.mubr.msk.f32.vlgmr.msra.gmra.mrb[28].mxu1 %vm2452_vm11, %v4569_v23  ;;  %v4656_v23 = vld [vmem:[%s7442_s13 + $0x100] sm:$0xff] }
 0xc0e   :  { %v5630_v27 = vpop.f32.mrb[24].mxu0  ;;  %6168 = vmatpush3.bf16.msra.mxu1 %v6165_v63  ;;  %5544 = vmatprep.mubr.msk.f32.mxu1 %vm2452_vm11, %v4570_v25  ;;  %v4658_v25 = vld [vmem:[%s7442_s13 + $0x110] sm:$0xff] }
 0xc0f   :  { %v3316_v29 = vpop.f32.mrb[25].mxu0  ;;  %6170 = vmatprep.subr.bf16.mxu1 %v6169_v6 }
 0xc10   :  { %v6217_v31 = vpack.c.bf16 %v5630_v27, %v3316_v29  ;;  %v4259_v27 = vld [vmem:[%s7444_s15] sm:$0xff] }
 0xc11   :  { %5545 = vmatmul.mubr.msk.f32.gmra.mrb[30].mxu1 %vm2452_vm11, %v4571_v28  ;;  %5765 = vmatprep.mubr.msk.f32.mxu0 %vm2452_vm11, %v4259_v27  ;;  %v4222_v28 = vpop.permute.xlu0 %4221 }
 0xc12   :  { %v5655_v32 = vpop.f32.mrb[26].mxu0  ;;  %6172 = vmatpush3.bf16.msra.mxu1 %v6169_v6  ;;  %5555 = vmatprep.mubr.msk.f32.mxu1 %vm2452_vm11, %v2550_v30  ;;  %v4611_v6 = vld [vmem:[%s7442_s13 + $0x98] sm:$0xff] }
 0xc13   :  { %v3502_v33 = vpop.f32.mrb[27].mxu0  ;;  %6182 = vmatprep.subr.bf16.mxu1 %v6181_v1 }
 0xc14   :  { %v6229_v38 = vpack.c.bf16 %v5655_v32, %v3502_v33 }
 0xc15   :  { %5556 = vmatmul.mubr.msk.f32.vlgmr.msra.gmra.mrb[28].mxu1 %vm2452_vm11, %v2551_v14 }
 0xc16   :  { %v5658_v39 = vpop.f32.mrb[28].mxu0  ;;  %6184 = vmatpush3.bf16.msra.mxu1 %v6181_v1  ;;  %5558 = vmatprep.mubr.msk.f32.mxu1 %vm2452_vm11, %v2552_v34  ;;  %v4609_v1 = vld [vmem:[%s7442_s13 + $0x88] sm:$0xff] }
 0xc17   :  { %v3512_v41 = vpop.f32.mrb[29].mxu0  ;;  %6186 = vmatprep.subr.bf16.mxu1 %v6185_v7 }
 0xc18   :  { %v6233_v43 = vpack.c.bf16 %v5658_v39, %v3512_v41  ;;  %v4232_v39 = vpop.permute.xlu0 %4231 }
 0xc19   :  { %5559 = vmatmul.mubr.msk.f32.gmra.mrb[30].mxu1 %vm2452_vm11, %v2553_v40 }
 0xc1a   :  { %v5683_v44 = vpop.f32.mrb[30].mxu0  ;;  %6188 = vmatpush3.bf16.msra.mxu1 %v6185_v7  ;;  %5583 = vmatprep.mubr.msk.f32.mxu1 %vm2452_vm11, %v4584_v42 }
 0xc1b   :  { %v3698_v46 = vpop.f32.mrb[31].mxu0  ;;  %6198 = vmatprep.subr.bf16.mxu1 %v6197_v13 }
 0xc1c   :  { %v6245_v15 = vpack.c.bf16 %v5683_v44, %v3698_v46 }
 0xc1d   :  { %5584 = vmatmul.mubr.msk.f32.vlgmr.msra.gmra.mrb[28].mxu1 %vm2452_vm11, %v4585_v45 }
 0xc1e   :  { %v5686_v48 = vpop.f32.mrb[32].mxu0  ;;  %6200 = vmatpush3.bf16.msra.mxu1 %v6197_v13  ;;  %5586 = vmatprep.mubr.msk.f32.mxu1 %vm2452_vm11, %v4586_v47  ;;  %v4632_v13 = vld [vmem:[%s7442_s13 + $0xc0] sm:$0xff] }
 0xc1f   :  { %v3708_v51 = vpop.f32.mrb[33].mxu0  ;;  %6202 = vmatprep.subr.bf16.mxu1 %v6201_v21 }
 0xc20   :  { %v6249_v53 = vpack.c.bf16 %v5686_v48, %v3708_v51 }
 0xc21   :  { %5587 = vmatmul.mubr.msk.f32.gmra.mrb[30].mxu1 %vm2452_vm11, %v4587_v49 }
 0xc22   :  { %v5711_v54 = vpop.f32.mrb[34].mxu0  ;;  %6204 = vmatpush3.bf16.msra.mxu1 %v6201_v21  ;;  %5611 = vmatprep.mubr.msk.f32.mxu1 %vm2452_vm11, %v4596_v52  ;;  %v4646_v21 = vld [vmem:[%s7442_s13 + $0xf0] sm:$0xff]  ;;  %v4348_v52 = vld [vmem:[#allocation23] sm:$0xff] }
 0xc23   :  { %v3894_v35 = vpop.f32.mrb[35].mxu0  ;;  %6214 = vmatprep.subr.bf16.mxu1 %v6213_v26 }
 0xc24   :  { %v6261_v57 = vpack.c.bf16 %v5711_v54, %v3894_v35 }
 0xc25   :  { %5612 = vmatmul.mubr.msk.f32.vlgmr.msra.gmra.mrb[28].mxu1 %vm2452_vm11, %v4597_v55 }
 0xc26   :  { %v5714_v58 = vpop.f32.mrb[36].mxu0  ;;  %6216 = vmatpush3.bf16.msra.mxu1 %v6213_v26  ;;  %5614 = vmatprep.mubr.msk.f32.mxu1 %vm2452_vm11, %v4598_v56  ;;  %v4659_v26 = vld [vmem:[%s7442_s13 + $0x118] sm:$0xff]  ;;  %v4260_v56 = vld [vmem:[%s7444_s15 + $0x8] sm:$0xff]  ;;  %s6767_s15 = smov [#allocation26]  }
 0xc27   :  { %v3904_v60 = vpop.f32.mrb[37].mxu0  ;;  %6218 = vmatprep.subr.bf16.mxu1 %v6217_v31  ;;  %s4515_s10 = sshll.u32 %s6767_s15, 4  ;;  %s4516_s10 = int_to_ptr.vmem [resolvable:$true] %s4515_s10 }
 0xc28   :  { %v6265_v62 = vpack.c.bf16 %v5714_v58, %v3904_v60  ;;  %v4351_v58 = vld [vmem:[#allocation23 + $0x18] sm:$0xff]  ;;  %s6706_s5 = scalar_lea.vmem %s4516_s10, 16  ;;  %s6710_s14 = scalar_lea.vmem %s4516_s10, 32 }
 0xc29   :  { %5615 = vmatmul.mubr.msk.f32.gmra.mrb[30].mxu1 %vm2452_vm11, %v4599_v59  ;;  %p6707_p8 = scmp.ne.s32.totalorder %s4516_s10, %s6706_s5  ;;  %p6711_p9 = scmp.lt.s32.totalorder %s4516_s10, %s4516_s10 }
 0xc2a   :  { %v5739_v63 = vpop.f32.mrb[38].mxu0  ;;  %6220 = vmatpush3.bf16.msra.mxu1 %v6217_v31  ;;  %5639 = vmatprep.mubr.msk.f32.mxu1 %vm2452_vm11, %v4608_v61  ;;  %p6712_p10 = scmp.lt.s32.totalorder %s6710_s14, %s6706_s5 }
 0xc2b   :  { %v4090_v2 = vpop.f32.mrb[39].mxu0  ;;  %6230 = vmatprep.subr.bf16.mxu1 %v6229_v38 }
 0xc2c   :  { %v6277_v4 = vpack.c.bf16 %v5739_v63, %v4090_v2  ;;  %v4344_v63 = vld [vmem:[%s7464_s20] sm:$0xff]  ;;  %p6713_p11 = por %p6712_p10, %p6711_p9 }
 0xc2d   :  { %5640 = vmatmul.mubr.msk.f32.vlgmr.msra.gmra.mrb[28].mxu1 %vm2452_vm11, %v4609_v1  ;;  %v4345_v1 = vld [vmem:[%s7464_s20 + $0x8] sm:$0xff] }
 0xc2e   :  { %v5742_v5 = vpop.f32.mrb[40].mxu0  ;;  %6232 = vmatpush3.bf16.msra.mxu1 %v6229_v38  ;;  %5642 = vmatprep.mubr.msk.f32.mxu1 %vm2452_vm11, %v4610_v3  ;;  %p6714_p12 = pnand %p6713_p11, %p6707_p8 }
 0xc2f   :  { %v4100_v7 = vpop.f32.mrb[41].mxu0  ;;  %6234 = vmatprep.subr.bf16.mxu1 %v6233_v43 }
 0xc30   :  { %v6281_v9 = vpack.c.bf16 %v5742_v5, %v4100_v7  ;;  %v4433_v7 = vld [vmem:[#allocation25] sm:$0x1] }
 0xc31   :  { %5643 = vmatmul.mubr.msk.f32.gmra.mrb[30].mxu1 %vm2452_vm11, %v4611_v6 }
 0xc32   :  { %6236 = vmatpush3.bf16.msra.mxu1 %v6233_v43  ;;  %5667 = vmatprep.mubr.msk.f32.mxu1 %vm2452_vm11, %v4620_v8 }
 0xc33   :  { %6246 = vmatprep.subr.bf16.mxu1 %v6245_v15 }
 0xc35   :  { %5668 = vmatmul.mubr.msk.f32.vlgmr.msra.gmra.mrb[28].mxu1 %vm2452_vm11, %v4621_v10 }
 0xc36   :  { %6248 = vmatpush3.bf16.msra.mxu1 %v6245_v15  ;;  %5670 = vmatprep.mubr.msk.f32.mxu1 %vm2452_vm11, %v4622_v11 }
 0xc37   :  { %6250 = vmatprep.subr.bf16.mxu1 %v6249_v53 }
 0xc39   :  { %5671 = vmatmul.mubr.msk.f32.gmra.mrb[30].mxu1 %vm2452_vm11, %v4623_v12 }
 0xc3a   :  { %6252 = vmatpush3.bf16.msra.mxu1 %v6249_v53  ;;  %5695 = vmatprep.mubr.msk.f32.mxu1 %vm2452_vm11, %v4632_v13  ;;  %v4349_v53 = vld [vmem:[#allocation23 + $0x8] sm:$0xff] }
 0xc3b   :  { %6262 = vmatprep.subr.bf16.mxu1 %v6261_v57  ;;  %v6293_v35 = vpack.c.bf16 %v4349_v53, %v4348_v52 }
 0xc3d   :  { %5696 = vmatmul.mubr.msk.f32.vlgmr.msra.gmra.mrb[28].mxu1 %vm2452_vm11, %v4633_v16 }
 0xc3e   :  { %6264 = vmatpush3.bf16.msra.mxu1 %v6261_v57  ;;  %5698 = vmatprep.mubr.msk.f32.mxu1 %vm2452_vm11, %v4634_v17  ;;  %v4350_v57 = vld [vmem:[#allocation23 + $0x10] sm:$0xff] }
 0xc3f   :  { %6266 = vmatprep.subr.bf16.mxu1 %v6265_v62  ;;  %v6297_v59 = vpack.c.bf16 %v4351_v58, %v4350_v57 }
 0xc41   :  { %5699 = vmatmul.mubr.msk.f32.gmra.mrb[30].mxu1 %vm2452_vm11, %v4635_v18 }
 0xc42   :  { %6268 = vmatpush3.bf16.msra.mxu1 %v6265_v62  ;;  %5723 = vmatprep.mubr.msk.f32.mxu1 %vm2452_vm11, %v4644_v19 }
 0xc43   :  { %6278 = vmatprep.subr.bf16.mxu1 %v6277_v4 }
 0xc45   :  { %5724 = vmatmul.mubr.msk.f32.vlgmr.msra.gmra.mrb[28].mxu1 %vm2452_vm11, %v4645_v20 }
 0xc46   :  { %6280 = vmatpush3.bf16.msra.mxu1 %v6277_v4  ;;  %5726 = vmatprep.mubr.msk.f32.mxu1 %vm2452_vm11, %v4646_v21 }
 0xc47   :  { %6282 = vmatprep.subr.bf16.mxu1 %v6281_v9 }
 0xc49   :  { %5727 = vmatmul.mubr.msk.f32.gmra.mrb[30].mxu1 %vm2452_vm11, %v4647_v22 }
 0xc4a   :  { %6284 = vmatpush3.bf16.msra.mxu1 %v6281_v9  ;;  %5751 = vmatprep.mubr.msk.f32.mxu1 %vm2452_vm11, %v4656_v23 }
 0xc4b   :  { %6301 = vmatprep.subr.bf16.mxu1 %v6766_v50  ;;  %v4227_v50 = vpop.permute.xlu1 %4226 }
 0xc4d   :  { %5752 = vmatmul.mubr.msk.f32.vlgmr.msra.gmra.mrb[28].mxu1 %vm2452_vm11, %v4657_v24 }
 0xc4e   :  { %5754 = vmatprep.mubr.msk.f32.mxu1 %vm2452_vm11, %v4658_v25 }
 0xc4f   :  { %v4237_v33 = vpop.permute.xlu1 %4236 }
 0xc51   :  { %5755 = vmatmul.mubr.msk.f32.gmra.mrb[30].mxu1 %vm2452_vm11, %v4659_v26 }
 0xc52   :  { %5783 = vmatprep.mubr.msk.f32.mxu1 %vm6764_vm0, %v6763_v0 }
 0xd20   :  { %v5753_v29 = vpop.f32.mrb[28].mxu1 }
 0xd21   :  { %v4240_v30 = vadd.f32 %v5753_v29, %v4227_v50  ;;  %v4192_v31 = vpop.f32.mrb[29].mxu1 }
 0xd22   :  { %v4239_v32 = vadd.f32 %v4222_v28, %v4192_v31 }
 0xd23   :  { %vm4244_vm14 = vcmp.ge.f32.partialorder %v4240_v30, 0.0  ;;  %v4248_v14 = vmul.f32 0.2, %v4240_v30 }
 0xd24   :  { %vm4243_vm15 = vcmp.ge.f32.partialorder %v4239_v32, 0.0  ;;  %v4247_v34 = vmul.f32 0.2, %v4239_v32  ;;  %v5756_v38 = vpop.f32.mrb[30].mxu1 }
 0xd25   :  { %v4252_v0 = vsel %vm4244_vm14, %v4240_v30, %v4248_v14  ;;  %v4242_v40 = vadd.f32 %v5756_v38, %v4237_v33  ;;  %v4202_v41 = vpop.f32.mrb[31].mxu1 }
 0xd26   :  { %v4256_v42 = vmul.f32 1.4142135, %v4252_v0  ;;  %v4251_v43 = vsel %vm4243_vm15, %v4239_v32, %v4247_v34  ;;  %v4241_v44 = vadd.f32 %v4232_v39, %v4202_v41 }
 0xd27   :  { %v4255_v45 = vmul.f32 1.4142135, %v4251_v43  ;;  %vm4246_vm0 = vcmp.ge.f32.partialorder %v4242_v40, 0.0  ;;  %v4250_v46 = vmul.f32 0.2, %v4242_v40 }
 0xd28   :  { %vm4245_vm1 = vcmp.ge.f32.partialorder %v4241_v44, 0.0  ;;  %v4249_v47 = vmul.f32 0.2, %v4241_v44 }
 0xd29   :  { %v4254_v15 = vsel %vm4246_vm0, %v4242_v40, %v4250_v46  ;;  %v6285_v48 = vpack.c.bf16 %v4256_v42, %v4255_v45 }
 0xd2a   :  { %v4258_v49 = vmul.f32 1.4142135, %v4254_v15  ;;  %v4253_v51 = vsel %vm4245_vm1, %v4241_v44, %v4249_v47 }
 0xd2b   :  { %v4257_v54 = vmul.f32 1.4142135, %v4253_v51  ;;  %6286 = vmatprep.subr.bf16.mxu0 %v6285_v48 }
 0xd2c   :  { %6288 = vmatpush3.bf16.msra.mxu0 %v6285_v48 }
 0xd2d   :  { %v6289_v55 = vpack.c.bf16 %v4258_v49, %v4257_v54 }
 0xd2f   :  { %6290 = vmatprep.subr.bf16.mxu0 %v6289_v55 }
 0xd30   :  { %6292 = vmatpush3.bf16.msra.mxu0 %v6289_v55 }
 0xd31   :  { %6294 = vmatprep.subr.bf16.mxu0 %v6293_v35 }
 0xd33   :  { %5766 = vmatmul.mubr.msk.f32.vlgmr.msra.gmra.mrb[42].mxu0 %vm2452_vm11, %v4260_v56 }
 0xd34   :  { %6296 = vmatpush3.bf16.msra.mxu0 %v6293_v35 }
 0xd35   :  { %6298 = vmatprep.subr.bf16.mxu0 %v6297_v59 }
 0xd38   :  { %6300 = vmatpush3.bf16.msra.mxu0 %v6297_v59 }
 0xe06   :  { %v5767_v60 = vpop.f32.mrb[42].mxu0 }
 0xe07   :  { %v4343_v61 = vadd.f32 %v5767_v60, %v7162_v36  ;;  %v4333_v62 = vpop.f32.mrb[43].mxu0 }
 0xe08   :  { %v4342_v2 = vadd.f32 %v4333_v62, %v7164_v37 }
 0xe09   :  { %v4347_v4 = vmul.f32 %v4345_v1, %v4343_v61 }
 0xe0a   :  { %v4346_v3 = vmul.f32 %v4344_v63, %v4342_v2 }
 0xe0c   :  { %5776 = vmatprep.mubr.msk.f32.mxu0 %vm2452_vm11, %v4346_v3 }
 0xe0d   :  { %5777 = vmatmul.mubr.msk.f32.vlgmr.msra.gmra.mrb[44].mxu0 %vm2452_vm11, %v4347_v4 }
 0xee0   :  { %v5778_v5 = vpop.f32.mrb[44].mxu0 }
 0xee1   :  { %v4424_v6 = vpop.f32.mrb[45].mxu0 }
 0xee2   :  { %v6302_v36 = vpack.c.bf16 %v5778_v5, %v4424_v6 }
 0xee4   :  { %6303 = vmatpush3.bf16.msra.mxu1 %v6302_v36 }
 0xee7   :  { %5784 = vmatmul.mubr.msk.f32.vlgmr.msra.gmra.mrb[32].mxu1 %vm632_vm6, %v4433_v7 }
 0xfba   :  { %v4503_v8 = vpop.f32.mrb[32].mxu1 }
 0xfbb   :  { %v5785_v9 = vpop.f32.mrb[33].mxu1  ;;  %4508 = vst.msk [vmem:[#allocation26] sm:$0x1] %vm4507_vm2, %v4503_v8 }
 0xfbc   :  { %6717 = shalt.err (!%p6714_p12)
}
 0xfbd   :  { %s7465_s27 = sld [smem:[#allocation41_spill]] }
 0xfc3   :  { %s6718_s9 = scalar_lea.hbm %s7465_s27, 16 }
 0xfc4   :  { %p6719_p13 = scmp.ne.s32.totalorder %s7465_s27, %s6718_s9  ;;  %p6722_p0 = scmp.lt.u32.totalorder %s6718_s9, %s7465_s27 }
 0xfc6   :  { %p6724_p1 = pnand %p6722_p0, %p6719_p13 }
 0xfc8   :  { %6727 = shalt.err (!%p6724_p1)
}
 0xfc9   :  { %4518 = dma.vmem_to_hbm [thread:$0]  %s4516_s10, 16, %s7465_s27, [#allocation4]  }
 0xfca   :  { %6744 = dma.done.wait [#allocation4], 16  }
 0xfcb   :  { %6745 = vsyncadd [#allocation4], 4294967280 }
 0xfcc   :  { %4522 = vsyncpa [#allocation3], 1 }
 0xfcd   :  { %4523 = vsyncpa [#allocation6], 1 }
 0xfce   :  { %4524 = vsyncpa [#allocation9], 1 }
 0xfcf   :  { %4525 = vsyncpa [#allocation12], 1 }
 0xfd0   :  { %4526 = vsyncpa [#allocation15], 1 }
 0xfd1   :  { %4527 = vsyncpa [#allocation18], 1 }
 0xfd2   :  { %4528 = vsyncpa [#allocation21], 1 }
 0xfd3   :  { %4529 = vsyncpa [#allocation24], 1 }
 0xfd4   :  { %4530 = vsyncpa [#allocation4], 1 }

</bundles_post_ra>
